<compile_context>
chip_gen: v5e
topology: v5e:2x2
jax: 0.10.0
libtpu: 0.0.40
codegen_flags: <defaults>
</compile_context>

<pallas_src>
import functools

import jax
import jax.numpy as jnp
from jax.experimental import pallas as pl
from jax.experimental.pallas import tpu as pltpu


def _leaky_relu_kernel(x_ref, o_ref, *, negative_slope):
    x = x_ref[...]
    o_ref[...] = jnp.where(x > 0, x, x * negative_slope)


def _tuning_for_device():
    """Returns (target_block_bytes, vmem_limit_bytes_or_None) per TPU gen."""
    try:
        kind = jax.devices()[0].device_kind.lower()
    except Exception:  # pragma: no cover - defensive
        kind = ""
    if "v6" in kind:
        # v6e: 128 MiB physical VMEM, 32 MiB default scoped.  4 MiB blocks
        # (16 MiB of double-buffered in+out) + raised limit for headroom.
        return 4 * 1024 * 1024, 64 * 1024 * 1024
    if "v7" in kind:
        # v7x: 64 MiB physical per TC, 32 MiB default scoped.  Keep 4 MiB
        # blocks and do NOT scale past that (sized per-TC, two TCs per chip).
        return 4 * 1024 * 1024, None
    # v5e and older / unknown: 16 MiB default scoped VMEM -> 2 MiB blocks
    # (8 MiB of buffers), already ~85%+ of the ~820 GB/s roofline.
    return 2 * 1024 * 1024, None


# Below this, the fixed pallas_call launch + pipeline prologue dominates and
# XLA's fused elementwise is already at roofline.
_SMALL_INPUT_BYTES = 512 * 1024


def leaky_relu_pallas(x: jax.Array, negative_slope: float = 0.01,
                      donate_input: bool = False) -> jax.Array:
    """Elementwise LeakyReLU: out = x if x > 0 else x * negative_slope."""
    orig_shape = x.shape
    dtype = x.dtype
    n = x.size
    if n == 0:
        return x

    itemsize = jnp.dtype(dtype).itemsize

    # Fast paths: tiny tensors (launch overhead dominates) and ragged sizes
    # (a pad + trailing slice would roughly triple the HBM traffic).
    if n * itemsize < _SMALL_INPUT_BYTES or n % 128 != 0:
        return jnp.where(x > 0, x, x * negative_slope)

    # dtype-aware sublane tiling: f32 -> 8, bf16 -> 16, int8/fp8 -> 32
    sublane = {4: 8, 2: 16, 1: 32}.get(itemsize, 8)

    # Widest lane-dense width (multiple of 128) dividing n -> no padding,
    # unmasked vst stores.
    width = 128
    for w in (2048, 1024, 512, 256):
        if n % w == 0:
            width = w
            break

    rows = n // width
    x2d = jnp.ravel(x).reshape(rows, width)  # free metadata reshape

    target_bytes, vmem_limit = _tuning_for_device()
    block_rows = max(target_bytes // (width * itemsize), sublane)
    block_rows = (block_rows // sublane) * sublane
    if block_rows > rows:
        block_rows = rows
    # Guarantee >= 2 row-blocks when possible so the "parallel" grid axis can
    # actually shard across both TensorCores on v7x.
    if rows >= 2 * sublane:
        half = (rows // 2) // sublane * sublane
        block_rows = min(block_rows, max(half, sublane))

    grid = (pl.cdiv(rows, block_rows),)

    compiler_kwargs = dict(dimension_semantics=("parallel",))
    if vmem_limit is not None:
        compiler_kwargs["vmem_limit_bytes"] = vmem_limit

    out2d = pl.pallas_call(
        functools.partial(_leaky_relu_kernel, negative_slope=negative_slope),
        out_shape=jax.ShapeDtypeStruct((rows, width), dtype),
        grid_spec=pltpu.PrefetchScalarGridSpec(
            num_scalar_prefetch=0,
            grid=grid,
            in_specs=[pl.BlockSpec((block_rows, width), lambda i: (i, 0))],
            out_specs=pl.BlockSpec((block_rows, width), lambda i: (i, 0)),
        ),
        compiler_params=pltpu.CompilerParams(**compiler_kwargs),
        # Advisory: lets XLA treat the call as bandwidth-bound and overlap it.
        cost_estimate=pl.CostEstimate(
            flops=n, transcendentals=0, bytes_accessed=2 * n * itemsize),
        # Optional in-place aliasing when the caller donates the input.
        input_output_aliases=({0: 0} if donate_input else {}),
    )(x2d)

    return out2d.reshape(orig_shape)


if __name__ == "__main__":
    negative_slope = 0.01

    def ref_fn(v):
        return jnp.where(v > 0, v, v * negative_slope)

    # 1) Small NCHW input consistent with the module's elementwise forward
    #    (takes the fused small-input fast path).
    x = jax.random.normal(jax.random.PRNGKey(0), (2, 4, 16, 16), dtype=jnp.float32)
    out = leaky_relu_pallas(x, negative_slope)
    jax.block_until_ready(out)
    assert out.shape == x.shape and out.dtype == x.dtype
    assert jnp.array_equal(out, ref_fn(x))

    # 2) Ragged-size input (n % 128 != 0) -> fused fast path, no pad/slice.
    x2 = jax.random.normal(jax.random.PRNGKey(1), (2, 3, 7, 5), dtype=jnp.float32)
    out2 = leaky_relu_pallas(x2, negative_slope)
    jax.block_until_ready(out2)
    assert out2.shape == x2.shape and out2.dtype == x2.dtype
    assert jnp.array_equal(out2, ref_fn(x2))

    # 3) Larger input that exercises the Pallas streaming kernel itself
    #    (2 MiB f32, lane-dense width 2048, multi-block grid).
    x3 = jax.random.normal(jax.random.PRNGKey(0), (4, 32, 64, 64), dtype=jnp.float32)
    out3 = leaky_relu_pallas(x3, negative_slope)
    jax.block_until_ready(out3)
    assert out3.shape == x3.shape and out3.dtype == x3.dtype
    assert jnp.array_equal(out3, ref_fn(x3))

    print("KERNEL_OK")
</pallas_src>

<mosaic_0001>
module attributes {stable_mosaic.version = 11 : i64} {
  func.func @_leaky_relu_kernel(%arg0: i32, %arg1: memref<128x2048xf32, #tpu.memory_space<vmem>>, %arg2: memref<128x2048xf32, #tpu.memory_space<vmem>>) attributes {dimension_semantics = [#tpu.dimension_semantics<parallel>], iteration_bounds = array<i64: 2>, scalar_prefetch = 0 : i64, scratch_operands = 0 : i64, tpu.core_type = #tpu.core_type<tc>, window_params = [{transform_indices = @transform_0, window_bounds = array<i64: 128, 2048>}, {transform_indices = @transform_1, window_bounds = array<i64: 128, 2048>}]} {
    %c0 = arith.constant 0 : index
    %c0_0 = arith.constant 0 : index
    %0 = vector.load %arg1[%c0, %c0_0] : memref<128x2048xf32, #tpu.memory_space<vmem>>, vector<128x2048xf32>
    %cst = arith.constant 0.000000e+00 : f32
    %1 = vector.broadcast %cst : f32 to vector<128x2048xf32>
    %2 = arith.cmpf ogt, %0, %1 : vector<128x2048xf32>
    %cst_1 = arith.constant 0.00999999977 : f32
    %3 = vector.broadcast %cst_1 : f32 to vector<128x2048xf32>
    %4 = arith.mulf %0, %3 : vector<128x2048xf32>
    %5 = arith.select %2, %0, %4 : vector<128x2048xi1>, vector<128x2048xf32>
    %c0_2 = arith.constant 0 : index
    %c0_3 = arith.constant 0 : index
    %6 = vector.load %arg2[%c0_2, %c0_3] : memref<128x2048xf32, #tpu.memory_space<vmem>>, vector<128x2048xf32>
    tpu.vector_store %arg2[%c0_2, %c0_3], %5 {strides = array<i32>} : memref<128x2048xf32, #tpu.memory_space<vmem>>, vector<128x2048xf32>,
    return
  }
  func.func @transform_0(%arg0: i32) -> (i32, i32) {
    %c0_i32 = arith.constant 0 : i32
    %c0_i32_0 = arith.constant 0 : i32
    return %arg0, %c0_i32 : i32, i32
  }
  func.func @transform_1(%arg0: i32) -> (i32, i32) {
    %c0_i32 = arith.constant 0 : i32
    %c0_i32_0 = arith.constant 0 : i32
    return %arg0, %c0_i32 : i32, i32
  }
}

</mosaic_0001>

<bundles_post_ra>
// kernel: tpu_custom_call.1
= control target key start
LH: loop header
LB: loop body
LE: loop exit
PB: predicated region body
PF: predicated region fallthrough
CT: control target
= control target key end

     0   :  { %6 = vsyncpa [#allocation3], 0  ;;  %s2336_s0 = inlined_call_operand.hbm [shape: f32[256,2048], index: 0, kind: input, shape index: {}]   ;;  %s2337_s1 = inlined_call_operand.hbm [shape: f32[256,2048], index: 1, kind: output, shape index: {}]  }
   0x1   :  { %8 = vsyncpa [#allocation3 + $0x1], 0 }
   0x2   :  { %9 = vsyncpa [#allocation4], 0 }
   0x3   :  { %11 = vsyncpa [#allocation4 + $0x1], 0  ;;  %s1692_s6 = smov 0   ;;  %s1694_s7 = smov 0  }
   0x4   :  { %s1696_s8 = smov 0   ;;  %s1698_s9 = smov 0  }
   0x5 LB: > { %s1713_s10 = sadd.s32 4294967295, %s1676_s9   ;;  %s1510_s11 = sadd.s32 4294967294, %s1676_s9   ;;  %s1676_s9 = sphi %s1698_s9, %s2347_s9   ;;  %s1672_s8 = sphi %s1696_s8, %s2346_s8   ;;  %s1668_s7 = sphi %s1694_s7, %s2345_s7   ;;  %s1664_s6 = sphi %s1692_s6, %s2344_s6  }
   0x6   : > { %s1717_s12 = sadd.s32 1, %s1676_s9   ;;  %s24_s13 = sadd.s32 1, %s1672_s8 }
   0x7   : > { %s21_s14 = ssub.s32 %s1676_s9, %s1717_s12  ;;  %p31_p0 = scmp.ne.s32.totalorder %s1672_s8, %s1668_s7 }
   0x8   : > { %p22_p1 = scmp.eq.s32.totalorder %s21_s14, 0  ;;  %p32_p2 = scmp.eq.s32.totalorder %s1676_s9, 0 }
   0x9   : > { %p37_p3 = scmp.ne.s32.totalorder %s1668_s7, %s1664_s6  ;;  %p38_p4 = scmp.eq.s32.totalorder %s1713_s10, 0 }
   0xa   : > { %s1729_s15 = scalar_select %p22_p1, %s1672_s8, %s24_s13  }
   0xb   : > { %p1731_p5 = por %p32_p2, %p31_p0  ;;  %p1735_p6 = por %p38_p4, %p37_p3 }
   0xc   : > { %p61_p7 = scmp.eq.s32.totalorder %s1713_s10, 1  ;;  %p67_p8 = scmp.eq.s32.totalorder %s1510_s11, 1 }
   0xd   : > { %p1542_p10 = scmp.lt.s32.totalorder %s1676_s9, 2  ;;  %s87_s20 = sand.u32 1, %s1672_s8  }
   0xe   : > { %p1742_p11 = por %p61_p7, %p31_p0  ;;  %p1746_p12 = por %p67_p8, %p37_p3 }
   0xf   : > { %s1527_s21 = sshll.u32 %s1676_s9, 11  ;;  %s1513_s22 = sshll.u32 %s87_s20, 11 }
  0x10   : > { %s97_s25 = scalar_lea.hbm %s2336_s0, %s1527_s21  ;;  %s91_s27 = scalar_lea.vmem [#allocation2], %s1513_s22 }
  0x11   : > { %s98_s26 = sshll.u32 %s97_s25, 4  ;;  %s100_s28 = sshll.u32 %s91_s27, 4  ;;  %s99_s26 = int_to_ptr.hbm [resolvable:$true] %s98_s26  ;;  %s101_s28 = int_to_ptr.vmem [resolvable:$true] %s100_s28 }
  0x12   : > { %p1757_p13 = pnand %p1542_p10, %p1731_p5  ;;  %p1517_p0 = scmp.ge.s32.totalorder %s1676_s9, 1 }
  0x13   : > { %p108_p1 = scmp.lt.s32.totalorder %s1676_s9, 3  ;;  %s88_s30 = scalar_lea.sflag [#allocation3], %s87_s20 }
  0x14   : > { %s1580_s2 = sshra.s32 %s99_s26, 4  ;;  %p1584_p3 = pneg %p1757_p13  ;;  %s1581_s2 = int_to_ptr.hbm [resolvable:$true] %s1580_s2 }
  0x15   : > { %s1582_s3 = scalar_lea.hbm %s1581_s2, 2048  ;;  %s1587_s11 = scalar_lea.hbm %s2336_s0, 4096 }
  0x16   : > { %p1583_p2 = scmp.ne.s32.totalorder %s1581_s2, %s1582_s3  ;;  %p1588_p5 = scmp.lt.s32.totalorder %s1581_s2, %s2336_s0 }
  0x17   : > { %p1589_p8 = scmp.lt.s32.totalorder %s1587_s11, %s1582_s3 }
  0x18   : > { %p1585_p4 = pnand %p1584_p3, %p1583_p2 }
  0x19   : > { %p1590_p10 = por %p1589_p8, %p1588_p5 }
  0x1a   : > { %p1586_p7 = pneg %p1585_p4 }
  0x1c   : > { %p1591_p9 = pnand %p1590_p10, %p1586_p7 }
  0x1e   : > { %1594 = shalt.err (!%p1591_p9)
}
  0x1f   : > { %s1678_s16 = smov 2048   ;;  %s1679_s20 = smov 128  }
  0x20   : > { %1537 = dma.hbm_to_vmem [thread:$0]  (!%p1757_p13), %s99_s26, 32768, %s101_s28, %s88_s30, %s1678_s16, %s1678_s16, %s1679_s20  }
  0x21   : > { %p109_p2 = pnand %p1517_p0, %p108_p1 }
  0x22   : > { %s1778_s21 = sand.u32 (!%p109_p2), 1, %s1668_s7  }
  0x23   : > { %112 = sbr.rel (%p109_p2) target bundleno = 304 (0x130), region = 24  ;;  %s1518_s22 = sshll.u32 (!%p109_p2), %s1778_s21, 11 }
  0x24   : > { %s115_s23 = scalar_lea.sflag (!%p109_p2), [#allocation3], %s1778_s21  ;;  %s1782_s24 = scalar_lea.vmem (!%p109_p2), [#allocation2], %s1518_s22 }
  0x28   : > { %1655 = dma.done.wait (%p1735_p6), %s115_s23, 32768  }
  0x29   : > { %1657 = vsyncadd (%p1735_p6), %s115_s23, 4294934528  ;;  %v140_v0 = vld [vmem:[%s1782_s24] sm:$0xff]  ;;  %v141_v1 = vld [vmem:[%s1782_s24 + $0x8] sm:$0xff]  ;;  %s1797_s17 = scalar_lea.vmem [#allocation5], %s1518_s22  ;;  %s1529_s25 = sshll.u32 %s1713_s10, 11 }
  0x2a   : > { %v142_v2 = vld [vmem:[%s1782_s24 + $0x10] sm:$0xff]  ;;  %vm396_vm0 = vcmp.gt.f32.partialorder %v140_v0, 0.0  ;;  %v652_v3 = vmul.f32 0.01, %v140_v0  ;;  %vm397_vm1 = vcmp.gt.f32.partialorder %v141_v1, 0.0  ;;  %v143_v6 = vld [vmem:[%s1782_s24 + $0x18] sm:$0xff]  ;;  %s1433_s27 = scalar_lea.hbm %s2337_s1, %s1529_s25 }
  0x2b   : > { %v653_v4 = vmul.f32 0.01, %v141_v1  ;;  %vm398_vm2 = vcmp.gt.f32.partialorder %v142_v2, 0.0  ;;  %v654_v5 = vmul.f32 0.01, %v142_v2  ;;  %v144_v7 = vld [vmem:[%s1782_s24 + $0x20] sm:$0xff] }
  0x2c   : > { %v145_v8 = vld [vmem:[%s1782_s24 + $0x28] sm:$0xff]  ;;  %v908_v9 = vsel %vm396_vm0, %v140_v0, %v652_v3  ;;  %vm399_vm3 = vcmp.gt.f32.partialorder %v143_v6, 0.0  ;;  %v655_v11 = vmul.f32 0.01, %v143_v6  ;;  %v146_v12 = vld [vmem:[%s1782_s24 + $0x30] sm:$0xff]  ;;  %v147_v13 = vld [vmem:[%s1782_s24 + $0x38] sm:$0xff] }
  0x2d   : > { %v909_v10 = vsel %vm397_vm1, %v141_v1, %v653_v4  ;;  %v148_v14 = vld [vmem:[%s1782_s24 + $0x40] sm:$0xff]  ;;  %1164 = vst [vmem:[%s1797_s17] sm:$0xff] %v908_v9  ;;  %v910_v15 = vsel %vm398_vm2, %v142_v2, %v654_v5  ;;  %vm400_vm4 = vcmp.gt.f32.partialorder %v144_v7, 0.0  ;;  %v656_v16 = vmul.f32 0.01, %v144_v7  ;;  %v149_v17 = vld [vmem:[%s1782_s24 + $0x48] sm:$0xff]  ;;  %v150_v18 = vld [vmem:[%s1782_s24 + $0x50] sm:$0xff] }
  0x2e   : > { %vm401_vm5 = vcmp.gt.f32.partialorder %v145_v8, 0.0  ;;  %1165 = vst [vmem:[%s1797_s17 + $0x8] sm:$0xff] %v909_v10  ;;  %v911_v19 = vsel %vm399_vm3, %v143_v6, %v655_v11  ;;  %v657_v20 = vmul.f32 0.01, %v145_v8  ;;  %vm402_vm6 = vcmp.gt.f32.partialorder %v146_v12, 0.0  ;;  %v151_v24 = vld [vmem:[%s1782_s24 + $0x58] sm:$0xff] }
  0x2f   : > { %v658_v21 = vmul.f32 0.01, %v146_v12  ;;  %1166 = vst [vmem:[%s1797_s17 + $0x10] sm:$0xff] %v910_v15  ;;  %v912_v22 = vsel %vm400_vm4, %v144_v7, %v656_v16  ;;  %vm403_vm7 = vcmp.gt.f32.partialorder %v147_v13, 0.0  ;;  %v659_v23 = vmul.f32 0.01, %v147_v13 }
  0x30   : > { %vm404_vm8 = vcmp.gt.f32.partialorder %v148_v14, 0.0  ;;  %1167 = vst [vmem:[%s1797_s17 + $0x18] sm:$0xff] %v911_v19  ;;  %v913_v25 = vsel %vm401_vm5, %v145_v8, %v657_v20  ;;  %v660_v27 = vmul.f32 0.01, %v148_v14  ;;  %vm405_vm9 = vcmp.gt.f32.partialorder %v149_v17, 0.0  ;;  %v152_v28 = vld [vmem:[%s1782_s24 + $0x60] sm:$0xff] }
  0x31   : > { %v914_v26 = vsel %vm402_vm6, %v146_v12, %v658_v21  ;;  %v153_v29 = vld [vmem:[%s1782_s24 + $0x68] sm:$0xff]  ;;  %1168 = vst [vmem:[%s1797_s17 + $0x20] sm:$0xff] %v912_v22  ;;  %v915_v30 = vsel %vm403_vm7, %v147_v13, %v659_v23  ;;  %v661_v31 = vmul.f32 0.01, %v149_v17  ;;  %vm406_vm10 = vcmp.gt.f32.partialorder %v150_v18, 0.0  ;;  %v154_v35 = vld [vmem:[%s1782_s24 + $0x70] sm:$0xff] }
  0x32   : > { %v662_v32 = vmul.f32 0.01, %v150_v18  ;;  %1169 = vst [vmem:[%s1797_s17 + $0x28] sm:$0xff] %v913_v25  ;;  %v916_v33 = vsel %vm404_vm8, %v148_v14, %v660_v27  ;;  %vm407_vm11 = vcmp.gt.f32.partialorder %v151_v24, 0.0  ;;  %v663_v34 = vmul.f32 0.01, %v151_v24 }
  0x33   : > { %1170 = vst [vmem:[%s1797_s17 + $0x30] sm:$0xff] %v914_v26  ;;  %v917_v36 = vsel %vm405_vm9, %v149_v17, %v661_v31  ;;  %vm408_vm12 = vcmp.gt.f32.partialorder %v152_v28, 0.0  ;;  %v664_v37 = vmul.f32 0.01, %v152_v28  ;;  %v155_v38 = vld [vmem:[%s1782_s24 + $0x78] sm:$0xff]  ;;  %v156_v39 = vld [vmem:[%s1782_s24 + $0x80] sm:$0xff] }
  0x34   : > { %1171 = vst [vmem:[%s1797_s17 + $0x38] sm:$0xff] %v915_v30  ;;  %v918_v40 = vsel %vm406_vm10, %v150_v18, %v662_v32  ;;  %vm409_vm13 = vcmp.gt.f32.partialorder %v153_v29, 0.0  ;;  %v665_v41 = vmul.f32 0.01, %v153_v29  ;;  %v666_v42 = vmul.f32 0.01, %v154_v35 }
  0x35   : > { %1172 = vst [vmem:[%s1797_s17 + $0x40] sm:$0xff] %v916_v33  ;;  %v919_v43 = vsel %vm407_vm11, %v151_v24, %v663_v34  ;;  %vm410_vm14 = vcmp.gt.f32.partialorder %v154_v35, 0.0  ;;  %v667_v44 = vmul.f32 0.01, %v155_v38  ;;  %v157_v45 = vld [vmem:[%s1782_s24 + $0x88] sm:$0xff]  ;;  %v920_v46 = vsel %vm408_vm12, %v152_v28, %v664_v37  ;;  %v158_v48 = vld [vmem:[%s1782_s24 + $0x90] sm:$0xff] }
  0x36   : > { %1173 = vst [vmem:[%s1797_s17 + $0x48] sm:$0xff] %v917_v36  ;;  %vm411_vm15 = vcmp.gt.f32.partialorder %v155_v38, 0.0  ;;  %v668_v47 = vmul.f32 0.01, %v156_v39  ;;  %v159_v49 = vld [vmem:[%s1782_s24 + $0x98] sm:$0xff]  ;;  %v921_v50 = vsel %vm409_vm13, %v153_v29, %v665_v41  ;;  %vm412_vm0 = vcmp.gt.f32.partialorder %v156_v39, 0.0 }
  0x37   : > { %1174 = vst [vmem:[%s1797_s17 + $0x50] sm:$0xff] %v918_v40  ;;  %v669_v51 = vmul.f32 0.01, %v157_v45  ;;  %v922_v52 = vsel %vm410_vm14, %v154_v35, %v666_v42  ;;  %vm413_vm1 = vcmp.gt.f32.partialorder %v157_v45, 0.0  ;;  %v670_v53 = vmul.f32 0.01, %v158_v48 }
  0x38   : > { %1175 = vst [vmem:[%s1797_s17 + $0x58] sm:$0xff] %v919_v43  ;;  %v160_v54 = vld [vmem:[%s1782_s24 + $0xa0] sm:$0xff]  ;;  %v161_v55 = vld [vmem:[%s1782_s24 + $0xa8] sm:$0xff]  ;;  %v923_v56 = vsel %vm411_vm15, %v155_v38, %v667_v44  ;;  %vm414_vm2 = vcmp.gt.f32.partialorder %v158_v48, 0.0  ;;  %v671_v57 = vmul.f32 0.01, %v159_v49  ;;  %v924_v59 = vsel %vm412_vm0, %v156_v39, %v668_v47 }
  0x39   : > { %1176 = vst [vmem:[%s1797_s17 + $0x60] sm:$0xff] %v920_v46  ;;  %v162_v58 = vld [vmem:[%s1782_s24 + $0xb0] sm:$0xff]  ;;  %vm415_vm3 = vcmp.gt.f32.partialorder %v159_v49, 0.0  ;;  %v672_v60 = vmul.f32 0.01, %v160_v54  ;;  %v163_v61 = vld [vmem:[%s1782_s24 + $0xb8] sm:$0xff]  ;;  %v925_v62 = vsel %vm413_vm1, %v157_v45, %v669_v51  ;;  %v926_v1 = vsel %vm414_vm2, %v158_v48, %v670_v53 }
  0x3a   : > { %1177 = vst [vmem:[%s1797_s17 + $0x68] sm:$0xff] %v921_v50  ;;  %vm416_vm4 = vcmp.gt.f32.partialorder %v160_v54, 0.0  ;;  %v673_v63 = vmul.f32 0.01, %v161_v55  ;;  %v164_v0 = vld [vmem:[%s1782_s24 + $0xc0] sm:$0xff]  ;;  %vm417_vm5 = vcmp.gt.f32.partialorder %v161_v55, 0.0  ;;  %v927_v4 = vsel %vm415_vm3, %v159_v49, %v671_v57 }
  0x3b   : > { %1178 = vst [vmem:[%s1797_s17 + $0x70] sm:$0xff] %v922_v52  ;;  %v674_v2 = vmul.f32 0.01, %v162_v58  ;;  %v165_v3 = vld [vmem:[%s1782_s24 + $0xc8] sm:$0xff]  ;;  %vm418_vm6 = vcmp.gt.f32.partialorder %v162_v58, 0.0  ;;  %v166_v6 = vld [vmem:[%s1782_s24 + $0xd0] sm:$0xff]  ;;  %v928_v7 = vsel %vm416_vm4, %v160_v54, %v672_v60 }
  0x3c   : > { %1179 = vst [vmem:[%s1797_s17 + $0x78] sm:$0xff] %v923_v56  ;;  %v675_v5 = vmul.f32 0.01, %v163_v61  ;;  %vm419_vm7 = vcmp.gt.f32.partialorder %v163_v61, 0.0  ;;  %v676_v8 = vmul.f32 0.01, %v164_v0  ;;  %v929_v10 = vsel %vm417_vm5, %v161_v55, %v673_v63 }
  0x3d   : > { %1180 = vst [vmem:[%s1797_s17 + $0x80] sm:$0xff] %v924_v59  ;;  %v167_v9 = vld [vmem:[%s1782_s24 + $0xd8] sm:$0xff]  ;;  %vm420_vm8 = vcmp.gt.f32.partialorder %v164_v0, 0.0  ;;  %v677_v11 = vmul.f32 0.01, %v165_v3  ;;  %v168_v12 = vld [vmem:[%s1782_s24 + $0xe0] sm:$0xff]  ;;  %v930_v13 = vsel %vm418_vm6, %v162_v58, %v674_v2 }
  0x3e   : > { %1181 = vst [vmem:[%s1797_s17 + $0x88] sm:$0xff] %v925_v62  ;;  %vm421_vm9 = vcmp.gt.f32.partialorder %v165_v3, 0.0  ;;  %v678_v14 = vmul.f32 0.01, %v166_v6  ;;  %v169_v15 = vld [vmem:[%s1782_s24 + $0xe8] sm:$0xff]  ;;  %v931_v16 = vsel %vm419_vm7, %v163_v61, %v675_v5  ;;  %vm422_vm10 = vcmp.gt.f32.partialorder %v166_v6, 0.0 }
  0x3f   : > { %1182 = vst [vmem:[%s1797_s17 + $0x90] sm:$0xff] %v926_v1  ;;  %v679_v17 = vmul.f32 0.01, %v167_v9  ;;  %v170_v18 = vld [vmem:[%s1782_s24 + $0xf0] sm:$0xff]  ;;  %v932_v19 = vsel %vm420_vm8, %v164_v0, %v676_v8  ;;  %vm423_vm11 = vcmp.gt.f32.partialorder %v167_v9, 0.0  ;;  %v171_v21 = vld [vmem:[%s1782_s24 + $0xf8] sm:$0xff]  ;;  %v933_v22 = vsel %vm421_vm9, %v165_v3, %v677_v11 }
  0x40   : > { %1183 = vst [vmem:[%s1797_s17 + $0x98] sm:$0xff] %v927_v4  ;;  %v680_v20 = vmul.f32 0.01, %v168_v12  ;;  %vm424_vm12 = vcmp.gt.f32.partialorder %v168_v12, 0.0  ;;  %v681_v23 = vmul.f32 0.01, %v169_v15  ;;  %v934_v25 = vsel %vm422_vm10, %v166_v6, %v678_v14 }
  0x41   : > { %1184 = vst [vmem:[%s1797_s17 + $0xa0] sm:$0xff] %v928_v7  ;;  %v172_v24 = vld [vmem:[%s1782_s24 + $0x100] sm:$0xff]  ;;  %vm425_vm13 = vcmp.gt.f32.partialorder %v169_v15, 0.0  ;;  %v682_v26 = vmul.f32 0.01, %v170_v18  ;;  %v173_v27 = vld [vmem:[%s1782_s24 + $0x108] sm:$0xff]  ;;  %v935_v28 = vsel %vm423_vm11, %v167_v9, %v679_v17 }
  0x42   : > { %1185 = vst [vmem:[%s1797_s17 + $0xa8] sm:$0xff] %v929_v10  ;;  %vm426_vm14 = vcmp.gt.f32.partialorder %v170_v18, 0.0  ;;  %v683_v29 = vmul.f32 0.01, %v171_v21  ;;  %v174_v30 = vld [vmem:[%s1782_s24 + $0x110] sm:$0xff]  ;;  %v936_v31 = vsel %vm424_vm12, %v168_v12, %v680_v20  ;;  %vm427_vm15 = vcmp.gt.f32.partialorder %v171_v21, 0.0 }
  0x43   : > { %1186 = vst [vmem:[%s1797_s17 + $0xb0] sm:$0xff] %v930_v13  ;;  %v684_v32 = vmul.f32 0.01, %v172_v24  ;;  %v175_v33 = vld [vmem:[%s1782_s24 + $0x118] sm:$0xff]  ;;  %v937_v34 = vsel %vm425_vm13, %v169_v15, %v681_v23  ;;  %vm428_vm0 = vcmp.gt.f32.partialorder %v172_v24, 0.0  ;;  %v176_v36 = vld [vmem:[%s1782_s24 + $0x120] sm:$0xff]  ;;  %v938_v37 = vsel %vm426_vm14, %v170_v18, %v682_v26 }
  0x44   : > { %1187 = vst [vmem:[%s1797_s17 + $0xb8] sm:$0xff] %v931_v16  ;;  %v685_v35 = vmul.f32 0.01, %v173_v27  ;;  %vm429_vm1 = vcmp.gt.f32.partialorder %v173_v27, 0.0  ;;  %v686_v38 = vmul.f32 0.01, %v174_v30  ;;  %v939_v40 = vsel %vm427_vm15, %v171_v21, %v683_v29 }
  0x45   : > { %1188 = vst [vmem:[%s1797_s17 + $0xc0] sm:$0xff] %v932_v19  ;;  %v177_v39 = vld [vmem:[%s1782_s24 + $0x128] sm:$0xff]  ;;  %vm430_vm2 = vcmp.gt.f32.partialorder %v174_v30, 0.0  ;;  %v687_v41 = vmul.f32 0.01, %v175_v33  ;;  %v178_v42 = vld [vmem:[%s1782_s24 + $0x130] sm:$0xff]  ;;  %v940_v43 = vsel %vm428_vm0, %v172_v24, %v684_v32 }
  0x46   : > { %1189 = vst [vmem:[%s1797_s17 + $0xc8] sm:$0xff] %v933_v22  ;;  %vm431_vm3 = vcmp.gt.f32.partialorder %v175_v33, 0.0  ;;  %v688_v44 = vmul.f32 0.01, %v176_v36  ;;  %v179_v45 = vld [vmem:[%s1782_s24 + $0x138] sm:$0xff]  ;;  %v941_v46 = vsel %vm429_vm1, %v173_v27, %v685_v35  ;;  %vm432_vm4 = vcmp.gt.f32.partialorder %v176_v36, 0.0 }
  0x47   : > { %1190 = vst [vmem:[%s1797_s17 + $0xd0] sm:$0xff] %v934_v25  ;;  %v689_v47 = vmul.f32 0.01, %v177_v39  ;;  %v180_v48 = vld [vmem:[%s1782_s24 + $0x140] sm:$0xff]  ;;  %v942_v49 = vsel %vm430_vm2, %v174_v30, %v686_v38  ;;  %vm433_vm5 = vcmp.gt.f32.partialorder %v177_v39, 0.0  ;;  %v181_v51 = vld [vmem:[%s1782_s24 + $0x148] sm:$0xff]  ;;  %v943_v52 = vsel %vm431_vm3, %v175_v33, %v687_v41 }
  0x48   : > { %1191 = vst [vmem:[%s1797_s17 + $0xd8] sm:$0xff] %v935_v28  ;;  %v690_v50 = vmul.f32 0.01, %v178_v42  ;;  %vm434_vm6 = vcmp.gt.f32.partialorder %v178_v42, 0.0  ;;  %v691_v53 = vmul.f32 0.01, %v179_v45  ;;  %v944_v55 = vsel %vm432_vm4, %v176_v36, %v688_v44 }
  0x49   : > { %1192 = vst [vmem:[%s1797_s17 + $0xe0] sm:$0xff] %v936_v31  ;;  %v182_v54 = vld [vmem:[%s1782_s24 + $0x150] sm:$0xff]  ;;  %vm435_vm7 = vcmp.gt.f32.partialorder %v179_v45, 0.0  ;;  %v692_v56 = vmul.f32 0.01, %v180_v48  ;;  %v183_v57 = vld [vmem:[%s1782_s24 + $0x158] sm:$0xff]  ;;  %v945_v58 = vsel %vm433_vm5, %v177_v39, %v689_v47 }
  0x4a   : > { %1193 = vst [vmem:[%s1797_s17 + $0xe8] sm:$0xff] %v937_v34  ;;  %vm436_vm8 = vcmp.gt.f32.partialorder %v180_v48, 0.0  ;;  %v693_v59 = vmul.f32 0.01, %v181_v51  ;;  %v184_v60 = vld [vmem:[%s1782_s24 + $0x160] sm:$0xff]  ;;  %v946_v61 = vsel %vm434_vm6, %v178_v42, %v690_v50  ;;  %vm437_vm9 = vcmp.gt.f32.partialorder %v181_v51, 0.0 }
  0x4b   : > { %1194 = vst [vmem:[%s1797_s17 + $0xf0] sm:$0xff] %v938_v37  ;;  %v694_v62 = vmul.f32 0.01, %v182_v54  ;;  %v185_v63 = vld [vmem:[%s1782_s24 + $0x168] sm:$0xff]  ;;  %v947_v0 = vsel %vm435_vm7, %v179_v45, %v691_v53  ;;  %vm438_vm10 = vcmp.gt.f32.partialorder %v182_v54, 0.0  ;;  %v186_v2 = vld [vmem:[%s1782_s24 + $0x170] sm:$0xff]  ;;  %v948_v3 = vsel %vm436_vm8, %v180_v48, %v692_v56 }
  0x4c   : > { %1195 = vst [vmem:[%s1797_s17 + $0xf8] sm:$0xff] %v939_v40  ;;  %v695_v1 = vmul.f32 0.01, %v183_v57  ;;  %vm439_vm11 = vcmp.gt.f32.partialorder %v183_v57, 0.0  ;;  %v696_v4 = vmul.f32 0.01, %v184_v60  ;;  %v949_v6 = vsel %vm437_vm9, %v181_v51, %v693_v59 }
  0x4d   : > { %1196 = vst [vmem:[%s1797_s17 + $0x100] sm:$0xff] %v940_v43  ;;  %v187_v5 = vld [vmem:[%s1782_s24 + $0x178] sm:$0xff]  ;;  %vm440_vm12 = vcmp.gt.f32.partialorder %v184_v60, 0.0  ;;  %v697_v7 = vmul.f32 0.01, %v185_v63  ;;  %v188_v8 = vld [vmem:[%s1782_s24 + $0x180] sm:$0xff]  ;;  %v950_v9 = vsel %vm438_vm10, %v182_v54, %v694_v62 }
  0x4e   : > { %1197 = vst [vmem:[%s1797_s17 + $0x108] sm:$0xff] %v941_v46  ;;  %vm441_vm13 = vcmp.gt.f32.partialorder %v185_v63, 0.0  ;;  %v698_v10 = vmul.f32 0.01, %v186_v2  ;;  %v189_v11 = vld [vmem:[%s1782_s24 + $0x188] sm:$0xff]  ;;  %v951_v12 = vsel %vm439_vm11, %v183_v57, %v695_v1  ;;  %vm442_vm14 = vcmp.gt.f32.partialorder %v186_v2, 0.0 }
  0x4f   : > { %1198 = vst [vmem:[%s1797_s17 + $0x110] sm:$0xff] %v942_v49  ;;  %v699_v13 = vmul.f32 0.01, %v187_v5  ;;  %v190_v14 = vld [vmem:[%s1782_s24 + $0x190] sm:$0xff]  ;;  %v952_v15 = vsel %vm440_vm12, %v184_v60, %v696_v4  ;;  %vm443_vm15 = vcmp.gt.f32.partialorder %v187_v5, 0.0  ;;  %v191_v17 = vld [vmem:[%s1782_s24 + $0x198] sm:$0xff]  ;;  %v953_v18 = vsel %vm441_vm13, %v185_v63, %v697_v7 }
  0x50   : > { %1199 = vst [vmem:[%s1797_s17 + $0x118] sm:$0xff] %v943_v52  ;;  %v700_v16 = vmul.f32 0.01, %v188_v8  ;;  %vm444_vm0 = vcmp.gt.f32.partialorder %v188_v8, 0.0  ;;  %v701_v19 = vmul.f32 0.01, %v189_v11  ;;  %v954_v21 = vsel %vm442_vm14, %v186_v2, %v698_v10 }
  0x51   : > { %1200 = vst [vmem:[%s1797_s17 + $0x120] sm:$0xff] %v944_v55  ;;  %v192_v20 = vld [vmem:[%s1782_s24 + $0x1a0] sm:$0xff]  ;;  %vm445_vm1 = vcmp.gt.f32.partialorder %v189_v11, 0.0  ;;  %v702_v22 = vmul.f32 0.01, %v190_v14  ;;  %v193_v23 = vld [vmem:[%s1782_s24 + $0x1a8] sm:$0xff]  ;;  %v955_v24 = vsel %vm443_vm15, %v187_v5, %v699_v13 }
  0x52   : > { %1201 = vst [vmem:[%s1797_s17 + $0x128] sm:$0xff] %v945_v58  ;;  %vm446_vm2 = vcmp.gt.f32.partialorder %v190_v14, 0.0  ;;  %v703_v25 = vmul.f32 0.01, %v191_v17  ;;  %v194_v26 = vld [vmem:[%s1782_s24 + $0x1b0] sm:$0xff]  ;;  %v956_v27 = vsel %vm444_vm0, %v188_v8, %v700_v16  ;;  %vm447_vm3 = vcmp.gt.f32.partialorder %v191_v17, 0.0 }
  0x53   : > { %1202 = vst [vmem:[%s1797_s17 + $0x130] sm:$0xff] %v946_v61  ;;  %v704_v28 = vmul.f32 0.01, %v192_v20  ;;  %v195_v29 = vld [vmem:[%s1782_s24 + $0x1b8] sm:$0xff]  ;;  %v957_v30 = vsel %vm445_vm1, %v189_v11, %v701_v19  ;;  %vm448_vm4 = vcmp.gt.f32.partialorder %v192_v20, 0.0  ;;  %v196_v32 = vld [vmem:[%s1782_s24 + $0x1c0] sm:$0xff]  ;;  %v958_v33 = vsel %vm446_vm2, %v190_v14, %v702_v22 }
  0x54   : > { %1203 = vst [vmem:[%s1797_s17 + $0x138] sm:$0xff] %v947_v0  ;;  %v705_v31 = vmul.f32 0.01, %v193_v23  ;;  %vm449_vm5 = vcmp.gt.f32.partialorder %v193_v23, 0.0  ;;  %v706_v34 = vmul.f32 0.01, %v194_v26  ;;  %v959_v36 = vsel %vm447_vm3, %v191_v17, %v703_v25 }
  0x55   : > { %1204 = vst [vmem:[%s1797_s17 + $0x140] sm:$0xff] %v948_v3  ;;  %v197_v35 = vld [vmem:[%s1782_s24 + $0x1c8] sm:$0xff]  ;;  %vm450_vm6 = vcmp.gt.f32.partialorder %v194_v26, 0.0  ;;  %v707_v37 = vmul.f32 0.01, %v195_v29  ;;  %v198_v38 = vld [vmem:[%s1782_s24 + $0x1d0] sm:$0xff]  ;;  %v960_v39 = vsel %vm448_vm4, %v192_v20, %v704_v28 }
  0x56   : > { %1205 = vst [vmem:[%s1797_s17 + $0x148] sm:$0xff] %v949_v6  ;;  %vm451_vm7 = vcmp.gt.f32.partialorder %v195_v29, 0.0  ;;  %v708_v40 = vmul.f32 0.01, %v196_v32  ;;  %v199_v41 = vld [vmem:[%s1782_s24 + $0x1d8] sm:$0xff]  ;;  %v961_v42 = vsel %vm449_vm5, %v193_v23, %v705_v31  ;;  %vm452_vm8 = vcmp.gt.f32.partialorder %v196_v32, 0.0 }
  0x57   : > { %1206 = vst [vmem:[%s1797_s17 + $0x150] sm:$0xff] %v950_v9  ;;  %v709_v43 = vmul.f32 0.01, %v197_v35  ;;  %v200_v44 = vld [vmem:[%s1782_s24 + $0x1e0] sm:$0xff]  ;;  %v962_v45 = vsel %vm450_vm6, %v194_v26, %v706_v34  ;;  %vm453_vm9 = vcmp.gt.f32.partialorder %v197_v35, 0.0  ;;  %v201_v47 = vld [vmem:[%s1782_s24 + $0x1e8] sm:$0xff]  ;;  %v963_v48 = vsel %vm451_vm7, %v195_v29, %v707_v37 }
  0x58   : > { %1207 = vst [vmem:[%s1797_s17 + $0x158] sm:$0xff] %v951_v12  ;;  %v710_v46 = vmul.f32 0.01, %v198_v38  ;;  %vm454_vm10 = vcmp.gt.f32.partialorder %v198_v38, 0.0  ;;  %v711_v49 = vmul.f32 0.01, %v199_v41  ;;  %v964_v51 = vsel %vm452_vm8, %v196_v32, %v708_v40 }
  0x59   : > { %1208 = vst [vmem:[%s1797_s17 + $0x160] sm:$0xff] %v952_v15  ;;  %v202_v50 = vld [vmem:[%s1782_s24 + $0x1f0] sm:$0xff]  ;;  %vm455_vm11 = vcmp.gt.f32.partialorder %v199_v41, 0.0  ;;  %v712_v52 = vmul.f32 0.01, %v200_v44  ;;  %v203_v53 = vld [vmem:[%s1782_s24 + $0x1f8] sm:$0xff]  ;;  %v965_v54 = vsel %vm453_vm9, %v197_v35, %v709_v43 }
  0x5a   : > { %1209 = vst [vmem:[%s1797_s17 + $0x168] sm:$0xff] %v953_v18  ;;  %vm456_vm12 = vcmp.gt.f32.partialorder %v200_v44, 0.0  ;;  %v713_v55 = vmul.f32 0.01, %v201_v47  ;;  %v204_v56 = vld [vmem:[%s1782_s24 + $0x200] sm:$0xff]  ;;  %v966_v57 = vsel %vm454_vm10, %v198_v38, %v710_v46  ;;  %vm457_vm13 = vcmp.gt.f32.partialorder %v201_v47, 0.0 }
  0x5b   : > { %1210 = vst [vmem:[%s1797_s17 + $0x170] sm:$0xff] %v954_v21  ;;  %v714_v58 = vmul.f32 0.01, %v202_v50  ;;  %v205_v59 = vld [vmem:[%s1782_s24 + $0x208] sm:$0xff]  ;;  %v967_v60 = vsel %vm455_vm11, %v199_v41, %v711_v49  ;;  %vm458_vm14 = vcmp.gt.f32.partialorder %v202_v50, 0.0  ;;  %v206_v62 = vld [vmem:[%s1782_s24 + $0x210] sm:$0xff]  ;;  %v968_v63 = vsel %vm456_vm12, %v200_v44, %v712_v52 }
  0x5c   : > { %1211 = vst [vmem:[%s1797_s17 + $0x178] sm:$0xff] %v955_v24  ;;  %v715_v61 = vmul.f32 0.01, %v203_v53  ;;  %vm459_vm15 = vcmp.gt.f32.partialorder %v203_v53, 0.0  ;;  %v716_v0 = vmul.f32 0.01, %v204_v56  ;;  %v969_v2 = vsel %vm457_vm13, %v201_v47, %v713_v55 }
  0x5d   : > { %1212 = vst [vmem:[%s1797_s17 + $0x180] sm:$0xff] %v956_v27  ;;  %v207_v1 = vld [vmem:[%s1782_s24 + $0x218] sm:$0xff]  ;;  %vm460_vm0 = vcmp.gt.f32.partialorder %v204_v56, 0.0  ;;  %v717_v3 = vmul.f32 0.01, %v205_v59  ;;  %v208_v4 = vld [vmem:[%s1782_s24 + $0x220] sm:$0xff]  ;;  %v970_v5 = vsel %vm458_vm14, %v202_v50, %v714_v58 }
  0x5e   : > { %1213 = vst [vmem:[%s1797_s17 + $0x188] sm:$0xff] %v957_v30  ;;  %vm461_vm1 = vcmp.gt.f32.partialorder %v205_v59, 0.0  ;;  %v718_v6 = vmul.f32 0.01, %v206_v62  ;;  %v209_v7 = vld [vmem:[%s1782_s24 + $0x228] sm:$0xff]  ;;  %v971_v8 = vsel %vm459_vm15, %v203_v53, %v715_v61  ;;  %vm462_vm2 = vcmp.gt.f32.partialorder %v206_v62, 0.0 }
  0x5f   : > { %1214 = vst [vmem:[%s1797_s17 + $0x190] sm:$0xff] %v958_v33  ;;  %v719_v9 = vmul.f32 0.01, %v207_v1  ;;  %v210_v10 = vld [vmem:[%s1782_s24 + $0x230] sm:$0xff]  ;;  %v972_v11 = vsel %vm460_vm0, %v204_v56, %v716_v0  ;;  %vm463_vm3 = vcmp.gt.f32.partialorder %v207_v1, 0.0  ;;  %v211_v13 = vld [vmem:[%s1782_s24 + $0x238] sm:$0xff]  ;;  %v973_v14 = vsel %vm461_vm1, %v205_v59, %v717_v3 }
  0x60   : > { %1215 = vst [vmem:[%s1797_s17 + $0x198] sm:$0xff] %v959_v36  ;;  %v720_v12 = vmul.f32 0.01, %v208_v4  ;;  %vm464_vm4 = vcmp.gt.f32.partialorder %v208_v4, 0.0  ;;  %v721_v15 = vmul.f32 0.01, %v209_v7  ;;  %v974_v17 = vsel %vm462_vm2, %v206_v62, %v718_v6 }
  0x61   : > { %1216 = vst [vmem:[%s1797_s17 + $0x1a0] sm:$0xff] %v960_v39  ;;  %v212_v16 = vld [vmem:[%s1782_s24 + $0x240] sm:$0xff]  ;;  %vm465_vm5 = vcmp.gt.f32.partialorder %v209_v7, 0.0  ;;  %v722_v18 = vmul.f32 0.01, %v210_v10  ;;  %v213_v19 = vld [vmem:[%s1782_s24 + $0x248] sm:$0xff]  ;;  %v975_v20 = vsel %vm463_vm3, %v207_v1, %v719_v9 }
  0x62   : > { %1217 = vst [vmem:[%s1797_s17 + $0x1a8] sm:$0xff] %v961_v42  ;;  %vm466_vm6 = vcmp.gt.f32.partialorder %v210_v10, 0.0  ;;  %v723_v21 = vmul.f32 0.01, %v211_v13  ;;  %v214_v22 = vld [vmem:[%s1782_s24 + $0x250] sm:$0xff]  ;;  %v976_v23 = vsel %vm464_vm4, %v208_v4, %v720_v12  ;;  %vm467_vm7 = vcmp.gt.f32.partialorder %v211_v13, 0.0 }
  0x63   : > { %1218 = vst [vmem:[%s1797_s17 + $0x1b0] sm:$0xff] %v962_v45  ;;  %v724_v24 = vmul.f32 0.01, %v212_v16  ;;  %v215_v25 = vld [vmem:[%s1782_s24 + $0x258] sm:$0xff]  ;;  %v977_v26 = vsel %vm465_vm5, %v209_v7, %v721_v15  ;;  %vm468_vm8 = vcmp.gt.f32.partialorder %v212_v16, 0.0  ;;  %v216_v28 = vld [vmem:[%s1782_s24 + $0x260] sm:$0xff]  ;;  %v978_v29 = vsel %vm466_vm6, %v210_v10, %v722_v18 }
  0x64   : > { %1219 = vst [vmem:[%s1797_s17 + $0x1b8] sm:$0xff] %v963_v48  ;;  %v725_v27 = vmul.f32 0.01, %v213_v19  ;;  %vm469_vm9 = vcmp.gt.f32.partialorder %v213_v19, 0.0  ;;  %v726_v30 = vmul.f32 0.01, %v214_v22  ;;  %v979_v32 = vsel %vm467_vm7, %v211_v13, %v723_v21 }
  0x65   : > { %1220 = vst [vmem:[%s1797_s17 + $0x1c0] sm:$0xff] %v964_v51  ;;  %v217_v31 = vld [vmem:[%s1782_s24 + $0x268] sm:$0xff]  ;;  %vm470_vm10 = vcmp.gt.f32.partialorder %v214_v22, 0.0  ;;  %v727_v33 = vmul.f32 0.01, %v215_v25  ;;  %v218_v34 = vld [vmem:[%s1782_s24 + $0x270] sm:$0xff]  ;;  %v980_v35 = vsel %vm468_vm8, %v212_v16, %v724_v24 }
  0x66   : > { %1221 = vst [vmem:[%s1797_s17 + $0x1c8] sm:$0xff] %v965_v54  ;;  %vm471_vm11 = vcmp.gt.f32.partialorder %v215_v25, 0.0  ;;  %v728_v36 = vmul.f32 0.01, %v216_v28  ;;  %v219_v37 = vld [vmem:[%s1782_s24 + $0x278] sm:$0xff]  ;;  %v981_v38 = vsel %vm469_vm9, %v213_v19, %v725_v27  ;;  %vm472_vm12 = vcmp.gt.f32.partialorder %v216_v28, 0.0 }
  0x67   : > { %1222 = vst [vmem:[%s1797_s17 + $0x1d0] sm:$0xff] %v966_v57  ;;  %v729_v39 = vmul.f32 0.01, %v217_v31  ;;  %v220_v40 = vld [vmem:[%s1782_s24 + $0x280] sm:$0xff]  ;;  %v982_v41 = vsel %vm470_vm10, %v214_v22, %v726_v30  ;;  %vm473_vm13 = vcmp.gt.f32.partialorder %v217_v31, 0.0  ;;  %v221_v43 = vld [vmem:[%s1782_s24 + $0x288] sm:$0xff]  ;;  %v983_v44 = vsel %vm471_vm11, %v215_v25, %v727_v33 }
  0x68   : > { %1223 = vst [vmem:[%s1797_s17 + $0x1d8] sm:$0xff] %v967_v60  ;;  %v730_v42 = vmul.f32 0.01, %v218_v34  ;;  %vm474_vm14 = vcmp.gt.f32.partialorder %v218_v34, 0.0  ;;  %v731_v45 = vmul.f32 0.01, %v219_v37  ;;  %v984_v47 = vsel %vm472_vm12, %v216_v28, %v728_v36 }
  0x69   : > { %1224 = vst [vmem:[%s1797_s17 + $0x1e0] sm:$0xff] %v968_v63  ;;  %v222_v46 = vld [vmem:[%s1782_s24 + $0x290] sm:$0xff]  ;;  %vm475_vm15 = vcmp.gt.f32.partialorder %v219_v37, 0.0  ;;  %v732_v48 = vmul.f32 0.01, %v220_v40  ;;  %v223_v49 = vld [vmem:[%s1782_s24 + $0x298] sm:$0xff]  ;;  %v985_v50 = vsel %vm473_vm13, %v217_v31, %v729_v39 }
  0x6a   : > { %1225 = vst [vmem:[%s1797_s17 + $0x1e8] sm:$0xff] %v969_v2  ;;  %vm476_vm0 = vcmp.gt.f32.partialorder %v220_v40, 0.0  ;;  %v733_v51 = vmul.f32 0.01, %v221_v43  ;;  %v224_v52 = vld [vmem:[%s1782_s24 + $0x2a0] sm:$0xff]  ;;  %v986_v53 = vsel %vm474_vm14, %v218_v34, %v730_v42  ;;  %vm477_vm1 = vcmp.gt.f32.partialorder %v221_v43, 0.0 }
  0x6b   : > { %1226 = vst [vmem:[%s1797_s17 + $0x1f0] sm:$0xff] %v970_v5  ;;  %v734_v54 = vmul.f32 0.01, %v222_v46  ;;  %v225_v55 = vld [vmem:[%s1782_s24 + $0x2a8] sm:$0xff]  ;;  %v987_v56 = vsel %vm475_vm15, %v219_v37, %v731_v45  ;;  %vm478_vm2 = vcmp.gt.f32.partialorder %v222_v46, 0.0  ;;  %v226_v58 = vld [vmem:[%s1782_s24 + $0x2b0] sm:$0xff]  ;;  %v988_v59 = vsel %vm476_vm0, %v220_v40, %v732_v48 }
  0x6c   : > { %1227 = vst [vmem:[%s1797_s17 + $0x1f8] sm:$0xff] %v971_v8  ;;  %v735_v57 = vmul.f32 0.01, %v223_v49  ;;  %vm479_vm3 = vcmp.gt.f32.partialorder %v223_v49, 0.0  ;;  %v736_v60 = vmul.f32 0.01, %v224_v52  ;;  %v989_v62 = vsel %vm477_vm1, %v221_v43, %v733_v51 }
  0x6d   : > { %1228 = vst [vmem:[%s1797_s17 + $0x200] sm:$0xff] %v972_v11  ;;  %v227_v61 = vld [vmem:[%s1782_s24 + $0x2b8] sm:$0xff]  ;;  %vm480_vm4 = vcmp.gt.f32.partialorder %v224_v52, 0.0  ;;  %v737_v63 = vmul.f32 0.01, %v225_v55  ;;  %v228_v0 = vld [vmem:[%s1782_s24 + $0x2c0] sm:$0xff]  ;;  %v990_v1 = vsel %vm478_vm2, %v222_v46, %v734_v54 }
  0x6e   : > { %1229 = vst [vmem:[%s1797_s17 + $0x208] sm:$0xff] %v973_v14  ;;  %vm481_vm5 = vcmp.gt.f32.partialorder %v225_v55, 0.0  ;;  %v738_v2 = vmul.f32 0.01, %v226_v58  ;;  %v229_v3 = vld [vmem:[%s1782_s24 + $0x2c8] sm:$0xff]  ;;  %v991_v4 = vsel %vm479_vm3, %v223_v49, %v735_v57  ;;  %vm482_vm6 = vcmp.gt.f32.partialorder %v226_v58, 0.0 }
  0x6f   : > { %1230 = vst [vmem:[%s1797_s17 + $0x210] sm:$0xff] %v974_v17  ;;  %v739_v5 = vmul.f32 0.01, %v227_v61  ;;  %v230_v6 = vld [vmem:[%s1782_s24 + $0x2d0] sm:$0xff]  ;;  %v992_v7 = vsel %vm480_vm4, %v224_v52, %v736_v60  ;;  %vm483_vm7 = vcmp.gt.f32.partialorder %v227_v61, 0.0  ;;  %v231_v9 = vld [vmem:[%s1782_s24 + $0x2d8] sm:$0xff]  ;;  %v993_v10 = vsel %vm481_vm5, %v225_v55, %v737_v63 }
  0x70   : > { %1231 = vst [vmem:[%s1797_s17 + $0x218] sm:$0xff] %v975_v20  ;;  %v740_v8 = vmul.f32 0.01, %v228_v0  ;;  %vm484_vm8 = vcmp.gt.f32.partialorder %v228_v0, 0.0  ;;  %v741_v11 = vmul.f32 0.01, %v229_v3  ;;  %v994_v13 = vsel %vm482_vm6, %v226_v58, %v738_v2 }
  0x71   : > { %1232 = vst [vmem:[%s1797_s17 + $0x220] sm:$0xff] %v976_v23  ;;  %v232_v12 = vld [vmem:[%s1782_s24 + $0x2e0] sm:$0xff]  ;;  %vm485_vm9 = vcmp.gt.f32.partialorder %v229_v3, 0.0  ;;  %v742_v14 = vmul.f32 0.01, %v230_v6  ;;  %v233_v15 = vld [vmem:[%s1782_s24 + $0x2e8] sm:$0xff]  ;;  %v995_v16 = vsel %vm483_vm7, %v227_v61, %v739_v5 }
  0x72   : > { %1233 = vst [vmem:[%s1797_s17 + $0x228] sm:$0xff] %v977_v26  ;;  %vm486_vm10 = vcmp.gt.f32.partialorder %v230_v6, 0.0  ;;  %v743_v17 = vmul.f32 0.01, %v231_v9  ;;  %v234_v18 = vld [vmem:[%s1782_s24 + $0x2f0] sm:$0xff]  ;;  %v996_v19 = vsel %vm484_vm8, %v228_v0, %v740_v8  ;;  %vm487_vm11 = vcmp.gt.f32.partialorder %v231_v9, 0.0 }
  0x73   : > { %1234 = vst [vmem:[%s1797_s17 + $0x230] sm:$0xff] %v978_v29  ;;  %v744_v20 = vmul.f32 0.01, %v232_v12  ;;  %v235_v21 = vld [vmem:[%s1782_s24 + $0x2f8] sm:$0xff]  ;;  %v997_v22 = vsel %vm485_vm9, %v229_v3, %v741_v11  ;;  %vm488_vm12 = vcmp.gt.f32.partialorder %v232_v12, 0.0  ;;  %v236_v24 = vld [vmem:[%s1782_s24 + $0x300] sm:$0xff]  ;;  %v998_v25 = vsel %vm486_vm10, %v230_v6, %v742_v14 }
  0x74   : > { %1235 = vst [vmem:[%s1797_s17 + $0x238] sm:$0xff] %v979_v32  ;;  %v745_v23 = vmul.f32 0.01, %v233_v15  ;;  %vm489_vm13 = vcmp.gt.f32.partialorder %v233_v15, 0.0  ;;  %v746_v26 = vmul.f32 0.01, %v234_v18  ;;  %v999_v28 = vsel %vm487_vm11, %v231_v9, %v743_v17 }
  0x75   : > { %1236 = vst [vmem:[%s1797_s17 + $0x240] sm:$0xff] %v980_v35  ;;  %v237_v27 = vld [vmem:[%s1782_s24 + $0x308] sm:$0xff]  ;;  %vm490_vm14 = vcmp.gt.f32.partialorder %v234_v18, 0.0  ;;  %v747_v29 = vmul.f32 0.01, %v235_v21  ;;  %v238_v30 = vld [vmem:[%s1782_s24 + $0x310] sm:$0xff]  ;;  %v1000_v31 = vsel %vm488_vm12, %v232_v12, %v744_v20 }
  0x76   : > { %1237 = vst [vmem:[%s1797_s17 + $0x248] sm:$0xff] %v981_v38  ;;  %vm491_vm15 = vcmp.gt.f32.partialorder %v235_v21, 0.0  ;;  %v748_v32 = vmul.f32 0.01, %v236_v24  ;;  %v239_v33 = vld [vmem:[%s1782_s24 + $0x318] sm:$0xff]  ;;  %v1001_v34 = vsel %vm489_vm13, %v233_v15, %v745_v23  ;;  %vm492_vm0 = vcmp.gt.f32.partialorder %v236_v24, 0.0 }
  0x77   : > { %1238 = vst [vmem:[%s1797_s17 + $0x250] sm:$0xff] %v982_v41  ;;  %v749_v35 = vmul.f32 0.01, %v237_v27  ;;  %v240_v36 = vld [vmem:[%s1782_s24 + $0x320] sm:$0xff]  ;;  %v1002_v37 = vsel %vm490_vm14, %v234_v18, %v746_v26  ;;  %vm493_vm1 = vcmp.gt.f32.partialorder %v237_v27, 0.0  ;;  %v241_v39 = vld [vmem:[%s1782_s24 + $0x328] sm:$0xff]  ;;  %v1003_v40 = vsel %vm491_vm15, %v235_v21, %v747_v29 }
  0x78   : > { %1239 = vst [vmem:[%s1797_s17 + $0x258] sm:$0xff] %v983_v44  ;;  %v750_v38 = vmul.f32 0.01, %v238_v30  ;;  %vm494_vm2 = vcmp.gt.f32.partialorder %v238_v30, 0.0  ;;  %v751_v41 = vmul.f32 0.01, %v239_v33  ;;  %v1004_v43 = vsel %vm492_vm0, %v236_v24, %v748_v32 }
  0x79   : > { %1240 = vst [vmem:[%s1797_s17 + $0x260] sm:$0xff] %v984_v47  ;;  %v242_v42 = vld [vmem:[%s1782_s24 + $0x330] sm:$0xff]  ;;  %vm495_vm3 = vcmp.gt.f32.partialorder %v239_v33, 0.0  ;;  %v752_v44 = vmul.f32 0.01, %v240_v36  ;;  %v243_v45 = vld [vmem:[%s1782_s24 + $0x338] sm:$0xff]  ;;  %v1005_v46 = vsel %vm493_vm1, %v237_v27, %v749_v35 }
  0x7a   : > { %1241 = vst [vmem:[%s1797_s17 + $0x268] sm:$0xff] %v985_v50  ;;  %vm496_vm4 = vcmp.gt.f32.partialorder %v240_v36, 0.0  ;;  %v753_v47 = vmul.f32 0.01, %v241_v39  ;;  %v244_v48 = vld [vmem:[%s1782_s24 + $0x340] sm:$0xff]  ;;  %v1006_v49 = vsel %vm494_vm2, %v238_v30, %v750_v38  ;;  %vm497_vm5 = vcmp.gt.f32.partialorder %v241_v39, 0.0 }
  0x7b   : > { %1242 = vst [vmem:[%s1797_s17 + $0x270] sm:$0xff] %v986_v53  ;;  %v754_v50 = vmul.f32 0.01, %v242_v42  ;;  %v245_v51 = vld [vmem:[%s1782_s24 + $0x348] sm:$0xff]  ;;  %v1007_v52 = vsel %vm495_vm3, %v239_v33, %v751_v41  ;;  %vm498_vm6 = vcmp.gt.f32.partialorder %v242_v42, 0.0  ;;  %v246_v54 = vld [vmem:[%s1782_s24 + $0x350] sm:$0xff]  ;;  %v1008_v55 = vsel %vm496_vm4, %v240_v36, %v752_v44 }
  0x7c   : > { %1243 = vst [vmem:[%s1797_s17 + $0x278] sm:$0xff] %v987_v56  ;;  %v755_v53 = vmul.f32 0.01, %v243_v45  ;;  %vm499_vm7 = vcmp.gt.f32.partialorder %v243_v45, 0.0  ;;  %v756_v56 = vmul.f32 0.01, %v244_v48  ;;  %v1009_v58 = vsel %vm497_vm5, %v241_v39, %v753_v47 }
  0x7d   : > { %1244 = vst [vmem:[%s1797_s17 + $0x280] sm:$0xff] %v988_v59  ;;  %v247_v57 = vld [vmem:[%s1782_s24 + $0x358] sm:$0xff]  ;;  %vm500_vm8 = vcmp.gt.f32.partialorder %v244_v48, 0.0  ;;  %v757_v59 = vmul.f32 0.01, %v245_v51  ;;  %v248_v60 = vld [vmem:[%s1782_s24 + $0x360] sm:$0xff]  ;;  %v1010_v61 = vsel %vm498_vm6, %v242_v42, %v754_v50 }
  0x7e   : > { %1245 = vst [vmem:[%s1797_s17 + $0x288] sm:$0xff] %v989_v62  ;;  %vm501_vm9 = vcmp.gt.f32.partialorder %v245_v51, 0.0  ;;  %v758_v62 = vmul.f32 0.01, %v246_v54  ;;  %v249_v63 = vld [vmem:[%s1782_s24 + $0x368] sm:$0xff]  ;;  %v1011_v0 = vsel %vm499_vm7, %v243_v45, %v755_v53  ;;  %vm502_vm10 = vcmp.gt.f32.partialorder %v246_v54, 0.0 }
  0x7f   : > { %1246 = vst [vmem:[%s1797_s17 + $0x290] sm:$0xff] %v990_v1  ;;  %v759_v1 = vmul.f32 0.01, %v247_v57  ;;  %v250_v2 = vld [vmem:[%s1782_s24 + $0x370] sm:$0xff]  ;;  %v1012_v3 = vsel %vm500_vm8, %v244_v48, %v756_v56  ;;  %vm503_vm11 = vcmp.gt.f32.partialorder %v247_v57, 0.0  ;;  %v251_v5 = vld [vmem:[%s1782_s24 + $0x378] sm:$0xff]  ;;  %v1013_v6 = vsel %vm501_vm9, %v245_v51, %v757_v59 }
  0x80   : > { %1247 = vst [vmem:[%s1797_s17 + $0x298] sm:$0xff] %v991_v4  ;;  %v760_v4 = vmul.f32 0.01, %v248_v60  ;;  %vm504_vm12 = vcmp.gt.f32.partialorder %v248_v60, 0.0  ;;  %v252_v8 = vld [vmem:[%s1782_s24 + $0x380] sm:$0xff]  ;;  %v1014_v9 = vsel %vm502_vm10, %v246_v54, %v758_v62  ;;  %vm505_vm13 = vcmp.gt.f32.partialorder %v249_v63, 0.0 }
  0x81   : > { %1248 = vst [vmem:[%s1797_s17 + $0x2a0] sm:$0xff] %v992_v7  ;;  %v761_v7 = vmul.f32 0.01, %v249_v63  ;;  %v253_v11 = vld [vmem:[%s1782_s24 + $0x388] sm:$0xff]  ;;  %v1015_v12 = vsel %vm503_vm11, %v247_v57, %v759_v1  ;;  %vm506_vm14 = vcmp.gt.f32.partialorder %v250_v2, 0.0  ;;  %v254_v14 = vld [vmem:[%s1782_s24 + $0x390] sm:$0xff] }
  0x82   : > { %1249 = vst [vmem:[%s1797_s17 + $0x2a8] sm:$0xff] %v993_v10  ;;  %v762_v10 = vmul.f32 0.01, %v250_v2  ;;  %v1016_v15 = vsel %vm504_vm12, %v248_v60, %v760_v4  ;;  %vm507_vm15 = vcmp.gt.f32.partialorder %v251_v5, 0.0  ;;  %v255_v17 = vld [vmem:[%s1782_s24 + $0x398] sm:$0xff]  ;;  %vm508_vm0 = vcmp.gt.f32.partialorder %v252_v8, 0.0 }
  0x83   : > { %1250 = vst [vmem:[%s1797_s17 + $0x2b0] sm:$0xff] %v994_v13  ;;  %v763_v13 = vmul.f32 0.01, %v251_v5  ;;  %v1017_v18 = vsel %vm505_vm13, %v249_v63, %v761_v7  ;;  %v256_v20 = vld [vmem:[%s1782_s24 + $0x3a0] sm:$0xff]  ;;  %vm509_vm1 = vcmp.gt.f32.partialorder %v253_v11, 0.0  ;;  %v257_v23 = vld [vmem:[%s1782_s24 + $0x3a8] sm:$0xff] }
  0x84   : > { %1251 = vst [vmem:[%s1797_s17 + $0x2b8] sm:$0xff] %v995_v16  ;;  %v764_v16 = vmul.f32 0.01, %v252_v8  ;;  %v1018_v21 = vsel %vm506_vm14, %v250_v2, %v762_v10  ;;  %vm510_vm2 = vcmp.gt.f32.partialorder %v254_v14, 0.0  ;;  %v258_v26 = vld [vmem:[%s1782_s24 + $0x3b0] sm:$0xff]  ;;  %vm511_vm3 = vcmp.gt.f32.partialorder %v255_v17, 0.0 }
  0x85   : > { %1252 = vst [vmem:[%s1797_s17 + $0x2c0] sm:$0xff] %v996_v19  ;;  %v765_v19 = vmul.f32 0.01, %v253_v11  ;;  %v1019_v24 = vsel %vm507_vm15, %v251_v5, %v763_v13  ;;  %v259_v29 = vld [vmem:[%s1782_s24 + $0x3b8] sm:$0xff]  ;;  %vm512_vm4 = vcmp.gt.f32.partialorder %v256_v20, 0.0  ;;  %v260_v32 = vld [vmem:[%s1782_s24 + $0x3c0] sm:$0xff] }
  0x86   : > { %1253 = vst [vmem:[%s1797_s17 + $0x2c8] sm:$0xff] %v997_v22  ;;  %v766_v22 = vmul.f32 0.01, %v254_v14  ;;  %v1020_v27 = vsel %vm508_vm0, %v252_v8, %v764_v16  ;;  %vm513_vm5 = vcmp.gt.f32.partialorder %v257_v23, 0.0  ;;  %v261_v35 = vld [vmem:[%s1782_s24 + $0x3c8] sm:$0xff]  ;;  %vm514_vm6 = vcmp.gt.f32.partialorder %v258_v26, 0.0 }
  0x87   : > { %1254 = vst [vmem:[%s1797_s17 + $0x2d0] sm:$0xff] %v998_v25  ;;  %v767_v25 = vmul.f32 0.01, %v255_v17  ;;  %v1021_v30 = vsel %vm509_vm1, %v253_v11, %v765_v19  ;;  %v262_v38 = vld [vmem:[%s1782_s24 + $0x3d0] sm:$0xff]  ;;  %vm515_vm7 = vcmp.gt.f32.partialorder %v259_v29, 0.0  ;;  %v263_v41 = vld [vmem:[%s1782_s24 + $0x3d8] sm:$0xff] }
  0x88   : > { %1255 = vst [vmem:[%s1797_s17 + $0x2d8] sm:$0xff] %v999_v28  ;;  %v768_v28 = vmul.f32 0.01, %v256_v20  ;;  %v1022_v33 = vsel %vm510_vm2, %v254_v14, %v766_v22  ;;  %vm516_vm8 = vcmp.gt.f32.partialorder %v260_v32, 0.0  ;;  %v264_v44 = vld [vmem:[%s1782_s24 + $0x3e0] sm:$0xff]  ;;  %vm517_vm9 = vcmp.gt.f32.partialorder %v261_v35, 0.0 }
  0x89   : > { %1256 = vst [vmem:[%s1797_s17 + $0x2e0] sm:$0xff] %v1000_v31  ;;  %v769_v31 = vmul.f32 0.01, %v257_v23  ;;  %v1023_v36 = vsel %vm511_vm3, %v255_v17, %v767_v25  ;;  %v265_v47 = vld [vmem:[%s1782_s24 + $0x3e8] sm:$0xff]  ;;  %vm518_vm10 = vcmp.gt.f32.partialorder %v262_v38, 0.0  ;;  %v266_v50 = vld [vmem:[%s1782_s24 + $0x3f0] sm:$0xff] }
  0x8a   : > { %1257 = vst [vmem:[%s1797_s17 + $0x2e8] sm:$0xff] %v1001_v34  ;;  %v770_v34 = vmul.f32 0.01, %v258_v26  ;;  %v1024_v39 = vsel %vm512_vm4, %v256_v20, %v768_v28  ;;  %vm519_vm11 = vcmp.gt.f32.partialorder %v263_v41, 0.0  ;;  %v267_v53 = vld [vmem:[%s1782_s24 + $0x3f8] sm:$0xff]  ;;  %vm520_vm12 = vcmp.gt.f32.partialorder %v264_v44, 0.0 }
  0x8b   : > { %1258 = vst [vmem:[%s1797_s17 + $0x2f0] sm:$0xff] %v1002_v37  ;;  %v771_v37 = vmul.f32 0.01, %v259_v29  ;;  %v1025_v42 = vsel %vm513_vm5, %v257_v23, %v769_v31  ;;  %v268_v56 = vld [vmem:[%s1782_s24 + $0x400] sm:$0xff]  ;;  %vm521_vm13 = vcmp.gt.f32.partialorder %v265_v47, 0.0  ;;  %v269_v59 = vld [vmem:[%s1782_s24 + $0x408] sm:$0xff] }
  0x8c   : > { %1259 = vst [vmem:[%s1797_s17 + $0x2f8] sm:$0xff] %v1003_v40  ;;  %v772_v40 = vmul.f32 0.01, %v260_v32  ;;  %v1026_v45 = vsel %vm514_vm6, %v258_v26, %v770_v34  ;;  %vm522_vm14 = vcmp.gt.f32.partialorder %v266_v50, 0.0  ;;  %v270_v62 = vld [vmem:[%s1782_s24 + $0x410] sm:$0xff]  ;;  %vm523_vm15 = vcmp.gt.f32.partialorder %v267_v53, 0.0 }
  0x8d   : > { %1260 = vst [vmem:[%s1797_s17 + $0x300] sm:$0xff] %v1004_v43  ;;  %v773_v43 = vmul.f32 0.01, %v261_v35  ;;  %v1027_v48 = vsel %vm515_vm7, %v259_v29, %v771_v37  ;;  %v271_v1 = vld [vmem:[%s1782_s24 + $0x418] sm:$0xff]  ;;  %vm524_vm0 = vcmp.gt.f32.partialorder %v268_v56, 0.0  ;;  %v272_v4 = vld [vmem:[%s1782_s24 + $0x420] sm:$0xff] }
  0x8e   : > { %1261 = vst [vmem:[%s1797_s17 + $0x308] sm:$0xff] %v1005_v46  ;;  %v774_v46 = vmul.f32 0.01, %v262_v38  ;;  %v1028_v51 = vsel %vm516_vm8, %v260_v32, %v772_v40  ;;  %vm525_vm1 = vcmp.gt.f32.partialorder %v269_v59, 0.0  ;;  %v273_v7 = vld [vmem:[%s1782_s24 + $0x428] sm:$0xff]  ;;  %vm526_vm2 = vcmp.gt.f32.partialorder %v270_v62, 0.0 }
  0x8f   : > { %1262 = vst [vmem:[%s1797_s17 + $0x310] sm:$0xff] %v1006_v49  ;;  %v775_v49 = vmul.f32 0.01, %v263_v41  ;;  %v1029_v54 = vsel %vm517_vm9, %v261_v35, %v773_v43  ;;  %v274_v10 = vld [vmem:[%s1782_s24 + $0x430] sm:$0xff]  ;;  %vm527_vm3 = vcmp.gt.f32.partialorder %v271_v1, 0.0  ;;  %v275_v13 = vld [vmem:[%s1782_s24 + $0x438] sm:$0xff] }
  0x90   : > { %1263 = vst [vmem:[%s1797_s17 + $0x318] sm:$0xff] %v1007_v52  ;;  %v776_v52 = vmul.f32 0.01, %v264_v44  ;;  %v1030_v57 = vsel %vm518_vm10, %v262_v38, %v774_v46  ;;  %vm528_vm4 = vcmp.gt.f32.partialorder %v272_v4, 0.0  ;;  %v276_v16 = vld [vmem:[%s1782_s24 + $0x440] sm:$0xff]  ;;  %vm529_vm5 = vcmp.gt.f32.partialorder %v273_v7, 0.0 }
  0x91   : > { %1264 = vst [vmem:[%s1797_s17 + $0x320] sm:$0xff] %v1008_v55  ;;  %v777_v55 = vmul.f32 0.01, %v265_v47  ;;  %v1031_v60 = vsel %vm519_vm11, %v263_v41, %v775_v49  ;;  %v277_v19 = vld [vmem:[%s1782_s24 + $0x448] sm:$0xff]  ;;  %vm530_vm6 = vcmp.gt.f32.partialorder %v274_v10, 0.0  ;;  %v278_v22 = vld [vmem:[%s1782_s24 + $0x450] sm:$0xff] }
  0x92   : > { %1265 = vst [vmem:[%s1797_s17 + $0x328] sm:$0xff] %v1009_v58  ;;  %v778_v58 = vmul.f32 0.01, %v266_v50  ;;  %v1032_v63 = vsel %vm520_vm12, %v264_v44, %v776_v52  ;;  %vm531_vm7 = vcmp.gt.f32.partialorder %v275_v13, 0.0  ;;  %v279_v25 = vld [vmem:[%s1782_s24 + $0x458] sm:$0xff]  ;;  %vm532_vm8 = vcmp.gt.f32.partialorder %v276_v16, 0.0 }
  0x93   : > { %1266 = vst [vmem:[%s1797_s17 + $0x330] sm:$0xff] %v1010_v61  ;;  %v779_v61 = vmul.f32 0.01, %v267_v53  ;;  %v1033_v2 = vsel %vm521_vm13, %v265_v47, %v777_v55  ;;  %v280_v28 = vld [vmem:[%s1782_s24 + $0x460] sm:$0xff]  ;;  %vm533_vm9 = vcmp.gt.f32.partialorder %v277_v19, 0.0  ;;  %v281_v31 = vld [vmem:[%s1782_s24 + $0x468] sm:$0xff] }
  0x94   : > { %1267 = vst [vmem:[%s1797_s17 + $0x338] sm:$0xff] %v1011_v0  ;;  %v780_v0 = vmul.f32 0.01, %v268_v56  ;;  %v1034_v5 = vsel %vm522_vm14, %v266_v50, %v778_v58  ;;  %vm534_vm10 = vcmp.gt.f32.partialorder %v278_v22, 0.0  ;;  %v282_v34 = vld [vmem:[%s1782_s24 + $0x470] sm:$0xff]  ;;  %vm535_vm11 = vcmp.gt.f32.partialorder %v279_v25, 0.0 }
  0x95   : > { %1268 = vst [vmem:[%s1797_s17 + $0x340] sm:$0xff] %v1012_v3  ;;  %v781_v3 = vmul.f32 0.01, %v269_v59  ;;  %v1035_v8 = vsel %vm523_vm15, %v267_v53, %v779_v61  ;;  %v283_v37 = vld [vmem:[%s1782_s24 + $0x478] sm:$0xff]  ;;  %vm536_vm12 = vcmp.gt.f32.partialorder %v280_v28, 0.0  ;;  %v284_v40 = vld [vmem:[%s1782_s24 + $0x480] sm:$0xff] }
  0x96   : > { %1269 = vst [vmem:[%s1797_s17 + $0x348] sm:$0xff] %v1013_v6  ;;  %v782_v6 = vmul.f32 0.01, %v270_v62  ;;  %v1036_v11 = vsel %vm524_vm0, %v268_v56, %v780_v0  ;;  %vm537_vm13 = vcmp.gt.f32.partialorder %v281_v31, 0.0  ;;  %v285_v43 = vld [vmem:[%s1782_s24 + $0x488] sm:$0xff]  ;;  %vm538_vm14 = vcmp.gt.f32.partialorder %v282_v34, 0.0 }
  0x97   : > { %1270 = vst [vmem:[%s1797_s17 + $0x350] sm:$0xff] %v1014_v9  ;;  %v783_v9 = vmul.f32 0.01, %v271_v1  ;;  %v1037_v14 = vsel %vm525_vm1, %v269_v59, %v781_v3  ;;  %v286_v46 = vld [vmem:[%s1782_s24 + $0x490] sm:$0xff]  ;;  %vm539_vm15 = vcmp.gt.f32.partialorder %v283_v37, 0.0  ;;  %v287_v49 = vld [vmem:[%s1782_s24 + $0x498] sm:$0xff] }
  0x98   : > { %1271 = vst [vmem:[%s1797_s17 + $0x358] sm:$0xff] %v1015_v12  ;;  %v784_v12 = vmul.f32 0.01, %v272_v4  ;;  %v1038_v17 = vsel %vm526_vm2, %v270_v62, %v782_v6  ;;  %vm540_vm0 = vcmp.gt.f32.partialorder %v284_v40, 0.0  ;;  %v288_v52 = vld [vmem:[%s1782_s24 + $0x4a0] sm:$0xff]  ;;  %vm541_vm1 = vcmp.gt.f32.partialorder %v285_v43, 0.0 }
  0x99   : > { %1272 = vst [vmem:[%s1797_s17 + $0x360] sm:$0xff] %v1016_v15  ;;  %v785_v15 = vmul.f32 0.01, %v273_v7  ;;  %v1039_v20 = vsel %vm527_vm3, %v271_v1, %v783_v9  ;;  %v289_v55 = vld [vmem:[%s1782_s24 + $0x4a8] sm:$0xff]  ;;  %vm542_vm2 = vcmp.gt.f32.partialorder %v286_v46, 0.0  ;;  %v290_v58 = vld [vmem:[%s1782_s24 + $0x4b0] sm:$0xff] }
  0x9a   : > { %1273 = vst [vmem:[%s1797_s17 + $0x368] sm:$0xff] %v1017_v18  ;;  %v786_v18 = vmul.f32 0.01, %v274_v10  ;;  %v1040_v23 = vsel %vm528_vm4, %v272_v4, %v784_v12  ;;  %vm543_vm3 = vcmp.gt.f32.partialorder %v287_v49, 0.0  ;;  %v291_v61 = vld [vmem:[%s1782_s24 + $0x4b8] sm:$0xff]  ;;  %vm544_vm4 = vcmp.gt.f32.partialorder %v288_v52, 0.0 }
  0x9b   : > { %1274 = vst [vmem:[%s1797_s17 + $0x370] sm:$0xff] %v1018_v21  ;;  %v787_v21 = vmul.f32 0.01, %v275_v13  ;;  %v1041_v26 = vsel %vm529_vm5, %v273_v7, %v785_v15  ;;  %v292_v0 = vld [vmem:[%s1782_s24 + $0x4c0] sm:$0xff]  ;;  %vm545_vm5 = vcmp.gt.f32.partialorder %v289_v55, 0.0  ;;  %v293_v3 = vld [vmem:[%s1782_s24 + $0x4c8] sm:$0xff] }
  0x9c   : > { %1275 = vst [vmem:[%s1797_s17 + $0x378] sm:$0xff] %v1019_v24  ;;  %v788_v24 = vmul.f32 0.01, %v276_v16  ;;  %v1042_v29 = vsel %vm530_vm6, %v274_v10, %v786_v18  ;;  %vm546_vm6 = vcmp.gt.f32.partialorder %v290_v58, 0.0  ;;  %v294_v6 = vld [vmem:[%s1782_s24 + $0x4d0] sm:$0xff]  ;;  %v295_v9 = vld [vmem:[%s1782_s24 + $0x4d8] sm:$0xff] }
  0x9d   : > { %1276 = vst [vmem:[%s1797_s17 + $0x380] sm:$0xff] %v1020_v27  ;;  %v789_v27 = vmul.f32 0.01, %v277_v19  ;;  %v1043_v32 = vsel %vm531_vm7, %v275_v13, %v787_v21  ;;  %vm547_vm7 = vcmp.gt.f32.partialorder %v291_v61, 0.0  ;;  %v296_v12 = vld [vmem:[%s1782_s24 + $0x4e0] sm:$0xff]  ;;  %v297_v15 = vld [vmem:[%s1782_s24 + $0x4e8] sm:$0xff] }
  0x9e   : > { %1277 = vst [vmem:[%s1797_s17 + $0x388] sm:$0xff] %v1021_v30  ;;  %v790_v30 = vmul.f32 0.01, %v278_v22  ;;  %v1044_v35 = vsel %vm532_vm8, %v276_v16, %v788_v24  ;;  %vm548_vm8 = vcmp.gt.f32.partialorder %v292_v0, 0.0  ;;  %v298_v18 = vld [vmem:[%s1782_s24 + $0x4f0] sm:$0xff]  ;;  %v299_v21 = vld [vmem:[%s1782_s24 + $0x4f8] sm:$0xff] }
  0x9f   : > { %1278 = vst [vmem:[%s1797_s17 + $0x390] sm:$0xff] %v1022_v33  ;;  %v791_v33 = vmul.f32 0.01, %v279_v25  ;;  %v1045_v38 = vsel %vm533_vm9, %v277_v19, %v789_v27  ;;  %vm549_vm9 = vcmp.gt.f32.partialorder %v293_v3, 0.0  ;;  %v300_v24 = vld [vmem:[%s1782_s24 + $0x500] sm:$0xff]  ;;  %v301_v27 = vld [vmem:[%s1782_s24 + $0x508] sm:$0xff] }
  0xa0   : > { %1279 = vst [vmem:[%s1797_s17 + $0x398] sm:$0xff] %v1023_v36  ;;  %v792_v36 = vmul.f32 0.01, %v280_v28  ;;  %v1046_v41 = vsel %vm534_vm10, %v278_v22, %v790_v30  ;;  %vm550_vm10 = vcmp.gt.f32.partialorder %v294_v6, 0.0  ;;  %v302_v30 = vld [vmem:[%s1782_s24 + $0x510] sm:$0xff]  ;;  %s1434_s28 = sshll.u32 %s1797_s17, 4  ;;  %s1435_s28 = int_to_ptr.vmem [resolvable:$true] %s1434_s28 }
  0xa1   : > { %1280 = vst [vmem:[%s1797_s17 + $0x3a0] sm:$0xff] %v1024_v39  ;;  %v793_v39 = vmul.f32 0.01, %v281_v31  ;;  %v1047_v44 = vsel %vm535_vm11, %v279_v25, %v791_v33  ;;  %vm551_vm11 = vcmp.gt.f32.partialorder %v295_v9, 0.0  ;;  %v303_v33 = vld [vmem:[%s1782_s24 + $0x518] sm:$0xff]  ;;  %s1436_s29 = sshll.u32 %s1433_s27, 4  ;;  %s1437_s29 = int_to_ptr.hbm [resolvable:$true] %s1436_s29 }
  0xa2   : > { %1281 = vst [vmem:[%s1797_s17 + $0x3a8] sm:$0xff] %v1025_v42  ;;  %v794_v42 = vmul.f32 0.01, %v282_v34  ;;  %v1048_v47 = vsel %vm536_vm12, %v280_v28, %v792_v36  ;;  %vm552_vm12 = vcmp.gt.f32.partialorder %v296_v12, 0.0  ;;  %v304_v36 = vld [vmem:[%s1782_s24 + $0x520] sm:$0xff]  ;;  %s1421_s30 = scalar_lea.sflag [#allocation4], %s1778_s21 }
  0xa3   : > { %1282 = vst [vmem:[%s1797_s17 + $0x3b0] sm:$0xff] %v1026_v45  ;;  %v795_v45 = vmul.f32 0.01, %v283_v37  ;;  %v1049_v50 = vsel %vm537_vm13, %v281_v31, %v793_v39  ;;  %vm553_vm13 = vcmp.gt.f32.partialorder %v297_v15, 0.0  ;;  %v305_v39 = vld [vmem:[%s1782_s24 + $0x528] sm:$0xff]  ;;  %s1624_s2 = sshra.s32 %s1437_s29, 4  ;;  %s1625_s2 = int_to_ptr.hbm [resolvable:$true] %s1624_s2 }
  0xa4   : > { %1283 = vst [vmem:[%s1797_s17 + $0x3b8] sm:$0xff] %v1027_v48  ;;  %v796_v48 = vmul.f32 0.01, %v284_v40  ;;  %v1050_v53 = vsel %vm538_vm14, %v282_v34, %v794_v42  ;;  %vm554_vm14 = vcmp.gt.f32.partialorder %v298_v18, 0.0  ;;  %v306_v42 = vld [vmem:[%s1782_s24 + $0x530] sm:$0xff]  ;;  %s1626_s3 = scalar_lea.hbm %s1625_s2, 2048  ;;  %p1631_p0 = scmp.lt.s32.totalorder %s1625_s2, %s2337_s1 }
  0xa5   : > { %1284 = vst [vmem:[%s1797_s17 + $0x3c0] sm:$0xff] %v1028_v51  ;;  %v797_v51 = vmul.f32 0.01, %v285_v43  ;;  %v1051_v56 = vsel %vm539_vm15, %v283_v37, %v795_v45  ;;  %vm555_vm15 = vcmp.gt.f32.partialorder %v299_v21, 0.0  ;;  %v307_v45 = vld [vmem:[%s1782_s24 + $0x538] sm:$0xff]  ;;  %p1627_p6 = scmp.ne.s32.totalorder %s1625_s2, %s1626_s3  ;;  %s1630_s11 = scalar_lea.hbm %s2337_s1, 4096 }
  0xa6   : > { %1285 = vst [vmem:[%s1797_s17 + $0x3c8] sm:$0xff] %v1029_v54  ;;  %v798_v54 = vmul.f32 0.01, %v286_v46  ;;  %v1052_v59 = vsel %vm540_vm0, %v284_v40, %v796_v48  ;;  %vm556_vm0 = vcmp.gt.f32.partialorder %v300_v24, 0.0  ;;  %v308_v48 = vld [vmem:[%s1782_s24 + $0x540] sm:$0xff]  ;;  %p1632_p1 = scmp.lt.s32.totalorder %s1630_s11, %s1626_s3 }
  0xa7   : > { %1286 = vst [vmem:[%s1797_s17 + $0x3d0] sm:$0xff] %v1030_v57  ;;  %v799_v57 = vmul.f32 0.01, %v287_v49  ;;  %v1053_v62 = vsel %vm541_vm1, %v285_v43, %v797_v51  ;;  %vm557_vm1 = vcmp.gt.f32.partialorder %v301_v27, 0.0  ;;  %v309_v51 = vld [vmem:[%s1782_s24 + $0x548] sm:$0xff]  ;;  %p1628_p9 = pnand %p1627_p6, %p1742_p11 }
  0xa8   : > { %1287 = vst [vmem:[%s1797_s17 + $0x3d8] sm:$0xff] %v1031_v60  ;;  %v800_v60 = vmul.f32 0.01, %v288_v52  ;;  %v1054_v1 = vsel %vm542_vm2, %v286_v46, %v798_v54  ;;  %vm558_vm2 = vcmp.gt.f32.partialorder %v302_v30, 0.0  ;;  %v310_v54 = vld [vmem:[%s1782_s24 + $0x550] sm:$0xff]  ;;  %p1633_p3 = por %p1632_p1, %p1631_p0 }
  0xa9   : > { %1288 = vst [vmem:[%s1797_s17 + $0x3e0] sm:$0xff] %v1032_v63  ;;  %v801_v63 = vmul.f32 0.01, %v289_v55  ;;  %v1055_v4 = vsel %vm543_vm3, %v287_v49, %v799_v57  ;;  %vm559_vm3 = vcmp.gt.f32.partialorder %v303_v33, 0.0  ;;  %v311_v57 = vld [vmem:[%s1782_s24 + $0x558] sm:$0xff]  ;;  %p1629_p13 = pneg %p1628_p9 }
  0xaa   : > { %1289 = vst [vmem:[%s1797_s17 + $0x3e8] sm:$0xff] %v1033_v2  ;;  %v802_v2 = vmul.f32 0.01, %v290_v58  ;;  %v1056_v7 = vsel %vm544_vm4, %v288_v52, %v800_v60  ;;  %vm560_vm4 = vcmp.gt.f32.partialorder %v304_v36, 0.0  ;;  %v312_v60 = vld [vmem:[%s1782_s24 + $0x560] sm:$0xff] }
  0xab   : > { %1290 = vst [vmem:[%s1797_s17 + $0x3f0] sm:$0xff] %v1034_v5  ;;  %v803_v5 = vmul.f32 0.01, %v291_v61  ;;  %v1057_v10 = vsel %vm545_vm5, %v289_v55, %v801_v63  ;;  %vm561_vm5 = vcmp.gt.f32.partialorder %v305_v39, 0.0  ;;  %v313_v63 = vld [vmem:[%s1782_s24 + $0x568] sm:$0xff]  ;;  %p1634_p4 = pnand %p1633_p3, %p1629_p13 }
  0xac   : > { %1291 = vst [vmem:[%s1797_s17 + $0x3f8] sm:$0xff] %v1035_v8  ;;  %v804_v8 = vmul.f32 0.01, %v292_v0  ;;  %v1058_v13 = vsel %vm546_vm6, %v290_v58, %v802_v2  ;;  %vm562_vm6 = vcmp.gt.f32.partialorder %v306_v42, 0.0  ;;  %v314_v2 = vld [vmem:[%s1782_s24 + $0x570] sm:$0xff] }
  0xad   : > { %1292 = vst [vmem:[%s1797_s17 + $0x400] sm:$0xff] %v1036_v11  ;;  %v805_v11 = vmul.f32 0.01, %v293_v3  ;;  %v1059_v16 = vsel %vm547_vm7, %v291_v61, %v803_v5  ;;  %vm563_vm7 = vcmp.gt.f32.partialorder %v307_v45, 0.0  ;;  %v315_v5 = vld [vmem:[%s1782_s24 + $0x578] sm:$0xff] }
  0xae   : > { %1293 = vst [vmem:[%s1797_s17 + $0x408] sm:$0xff] %v1037_v14  ;;  %v806_v14 = vmul.f32 0.01, %v294_v6  ;;  %v1060_v19 = vsel %vm548_vm8, %v292_v0, %v804_v8  ;;  %vm564_vm8 = vcmp.gt.f32.partialorder %v308_v48, 0.0  ;;  %v316_v8 = vld [vmem:[%s1782_s24 + $0x580] sm:$0xff] }
  0xaf   : > { %1294 = vst [vmem:[%s1797_s17 + $0x410] sm:$0xff] %v1038_v17  ;;  %v807_v17 = vmul.f32 0.01, %v295_v9  ;;  %v1061_v22 = vsel %vm549_vm9, %v293_v3, %v805_v11  ;;  %vm565_vm9 = vcmp.gt.f32.partialorder %v309_v51, 0.0  ;;  %v317_v11 = vld [vmem:[%s1782_s24 + $0x588] sm:$0xff] }
  0xb0   : > { %1295 = vst [vmem:[%s1797_s17 + $0x418] sm:$0xff] %v1039_v20  ;;  %v808_v20 = vmul.f32 0.01, %v296_v12  ;;  %v1062_v25 = vsel %vm550_vm10, %v294_v6, %v806_v14  ;;  %vm566_vm10 = vcmp.gt.f32.partialorder %v310_v54, 0.0  ;;  %v318_v14 = vld [vmem:[%s1782_s24 + $0x590] sm:$0xff] }
  0xb1   : > { %1296 = vst [vmem:[%s1797_s17 + $0x420] sm:$0xff] %v1040_v23  ;;  %v809_v23 = vmul.f32 0.01, %v297_v15  ;;  %v1063_v28 = vsel %vm551_vm11, %v295_v9, %v807_v17  ;;  %vm567_vm11 = vcmp.gt.f32.partialorder %v311_v57, 0.0  ;;  %v319_v17 = vld [vmem:[%s1782_s24 + $0x598] sm:$0xff] }
  0xb2   : > { %1297 = vst [vmem:[%s1797_s17 + $0x428] sm:$0xff] %v1041_v26  ;;  %v810_v26 = vmul.f32 0.01, %v298_v18  ;;  %v1064_v31 = vsel %vm552_vm12, %v296_v12, %v808_v20  ;;  %vm568_vm12 = vcmp.gt.f32.partialorder %v312_v60, 0.0  ;;  %v320_v20 = vld [vmem:[%s1782_s24 + $0x5a0] sm:$0xff] }
  0xb3   : > { %1298 = vst [vmem:[%s1797_s17 + $0x430] sm:$0xff] %v1042_v29  ;;  %v811_v29 = vmul.f32 0.01, %v299_v21  ;;  %v1065_v34 = vsel %vm553_vm13, %v297_v15, %v809_v23  ;;  %vm569_vm13 = vcmp.gt.f32.partialorder %v313_v63, 0.0  ;;  %v321_v23 = vld [vmem:[%s1782_s24 + $0x5a8] sm:$0xff] }
  0xb4   : > { %1299 = vst [vmem:[%s1797_s17 + $0x438] sm:$0xff] %v1043_v32  ;;  %v812_v32 = vmul.f32 0.01, %v300_v24  ;;  %v1066_v37 = vsel %vm554_vm14, %v298_v18, %v810_v26  ;;  %vm570_vm14 = vcmp.gt.f32.partialorder %v314_v2, 0.0  ;;  %v322_v26 = vld [vmem:[%s1782_s24 + $0x5b0] sm:$0xff] }
  0xb5   : > { %1300 = vst [vmem:[%s1797_s17 + $0x440] sm:$0xff] %v1044_v35  ;;  %v813_v35 = vmul.f32 0.01, %v301_v27  ;;  %v1067_v40 = vsel %vm555_vm15, %v299_v21, %v811_v29  ;;  %vm571_vm15 = vcmp.gt.f32.partialorder %v315_v5, 0.0  ;;  %v323_v29 = vld [vmem:[%s1782_s24 + $0x5b8] sm:$0xff] }
  0xb6   : > { %1301 = vst [vmem:[%s1797_s17 + $0x448] sm:$0xff] %v1045_v38  ;;  %v814_v38 = vmul.f32 0.01, %v302_v30  ;;  %v1068_v43 = vsel %vm556_vm0, %v300_v24, %v812_v32  ;;  %vm572_vm0 = vcmp.gt.f32.partialorder %v316_v8, 0.0  ;;  %v324_v32 = vld [vmem:[%s1782_s24 + $0x5c0] sm:$0xff] }
  0xb7   : > { %1302 = vst [vmem:[%s1797_s17 + $0x450] sm:$0xff] %v1046_v41  ;;  %v815_v41 = vmul.f32 0.01, %v303_v33  ;;  %v1069_v46 = vsel %vm557_vm1, %v301_v27, %v813_v35  ;;  %vm573_vm1 = vcmp.gt.f32.partialorder %v317_v11, 0.0  ;;  %v325_v35 = vld [vmem:[%s1782_s24 + $0x5c8] sm:$0xff] }
  0xb8   : > { %1303 = vst [vmem:[%s1797_s17 + $0x458] sm:$0xff] %v1047_v44  ;;  %v816_v44 = vmul.f32 0.01, %v304_v36  ;;  %v1070_v49 = vsel %vm558_vm2, %v302_v30, %v814_v38  ;;  %vm574_vm2 = vcmp.gt.f32.partialorder %v318_v14, 0.0  ;;  %v326_v38 = vld [vmem:[%s1782_s24 + $0x5d0] sm:$0xff] }
  0xb9   : > { %1304 = vst [vmem:[%s1797_s17 + $0x460] sm:$0xff] %v1048_v47  ;;  %v817_v47 = vmul.f32 0.01, %v305_v39  ;;  %v1071_v52 = vsel %vm559_vm3, %v303_v33, %v815_v41  ;;  %vm575_vm3 = vcmp.gt.f32.partialorder %v319_v17, 0.0  ;;  %v327_v41 = vld [vmem:[%s1782_s24 + $0x5d8] sm:$0xff] }
  0xba   : > { %1305 = vst [vmem:[%s1797_s17 + $0x468] sm:$0xff] %v1049_v50  ;;  %v818_v50 = vmul.f32 0.01, %v306_v42  ;;  %v1072_v55 = vsel %vm560_vm4, %v304_v36, %v816_v44  ;;  %vm576_vm4 = vcmp.gt.f32.partialorder %v320_v20, 0.0  ;;  %v328_v44 = vld [vmem:[%s1782_s24 + $0x5e0] sm:$0xff] }
  0xbb   : > { %1306 = vst [vmem:[%s1797_s17 + $0x470] sm:$0xff] %v1050_v53  ;;  %v819_v53 = vmul.f32 0.01, %v307_v45  ;;  %v1073_v58 = vsel %vm561_vm5, %v305_v39, %v817_v47  ;;  %vm577_vm5 = vcmp.gt.f32.partialorder %v321_v23, 0.0  ;;  %v329_v47 = vld [vmem:[%s1782_s24 + $0x5e8] sm:$0xff] }
  0xbc   : > { %1307 = vst [vmem:[%s1797_s17 + $0x478] sm:$0xff] %v1051_v56  ;;  %v820_v56 = vmul.f32 0.01, %v308_v48  ;;  %v1074_v61 = vsel %vm562_vm6, %v306_v42, %v818_v50  ;;  %vm578_vm6 = vcmp.gt.f32.partialorder %v322_v26, 0.0  ;;  %v330_v50 = vld [vmem:[%s1782_s24 + $0x5f0] sm:$0xff] }
  0xbd   : > { %1308 = vst [vmem:[%s1797_s17 + $0x480] sm:$0xff] %v1052_v59  ;;  %v821_v59 = vmul.f32 0.01, %v309_v51  ;;  %v1075_v0 = vsel %vm563_vm7, %v307_v45, %v819_v53  ;;  %vm579_vm7 = vcmp.gt.f32.partialorder %v323_v29, 0.0  ;;  %v331_v53 = vld [vmem:[%s1782_s24 + $0x5f8] sm:$0xff] }
  0xbe   : > { %1309 = vst [vmem:[%s1797_s17 + $0x488] sm:$0xff] %v1053_v62  ;;  %v822_v62 = vmul.f32 0.01, %v310_v54  ;;  %v1076_v3 = vsel %vm564_vm8, %v308_v48, %v820_v56  ;;  %vm580_vm8 = vcmp.gt.f32.partialorder %v324_v32, 0.0  ;;  %v332_v56 = vld [vmem:[%s1782_s24 + $0x600] sm:$0xff] }
  0xbf   : > { %1310 = vst [vmem:[%s1797_s17 + $0x490] sm:$0xff] %v1054_v1  ;;  %v823_v1 = vmul.f32 0.01, %v311_v57  ;;  %v1077_v6 = vsel %vm565_vm9, %v309_v51, %v821_v59  ;;  %vm581_vm9 = vcmp.gt.f32.partialorder %v325_v35, 0.0  ;;  %v333_v59 = vld [vmem:[%s1782_s24 + $0x608] sm:$0xff] }
  0xc0   : > { %1311 = vst [vmem:[%s1797_s17 + $0x498] sm:$0xff] %v1055_v4  ;;  %v824_v4 = vmul.f32 0.01, %v312_v60  ;;  %v1078_v9 = vsel %vm566_vm10, %v310_v54, %v822_v62  ;;  %vm582_vm10 = vcmp.gt.f32.partialorder %v326_v38, 0.0  ;;  %v334_v62 = vld [vmem:[%s1782_s24 + $0x610] sm:$0xff] }
  0xc1   : > { %1312 = vst [vmem:[%s1797_s17 + $0x4a0] sm:$0xff] %v1056_v7  ;;  %v825_v7 = vmul.f32 0.01, %v313_v63  ;;  %v1079_v12 = vsel %vm567_vm11, %v311_v57, %v823_v1  ;;  %vm583_vm11 = vcmp.gt.f32.partialorder %v327_v41, 0.0  ;;  %v335_v1 = vld [vmem:[%s1782_s24 + $0x618] sm:$0xff] }
  0xc2   : > { %1313 = vst [vmem:[%s1797_s17 + $0x4a8] sm:$0xff] %v1057_v10  ;;  %v826_v10 = vmul.f32 0.01, %v314_v2  ;;  %v1080_v15 = vsel %vm568_vm12, %v312_v60, %v824_v4  ;;  %vm584_vm12 = vcmp.gt.f32.partialorder %v328_v44, 0.0  ;;  %v336_v4 = vld [vmem:[%s1782_s24 + $0x620] sm:$0xff] }
  0xc3   : > { %1314 = vst [vmem:[%s1797_s17 + $0x4b0] sm:$0xff] %v1058_v13  ;;  %v827_v13 = vmul.f32 0.01, %v315_v5  ;;  %v1081_v18 = vsel %vm569_vm13, %v313_v63, %v825_v7  ;;  %vm585_vm13 = vcmp.gt.f32.partialorder %v329_v47, 0.0  ;;  %v337_v7 = vld [vmem:[%s1782_s24 + $0x628] sm:$0xff] }
  0xc4   : > { %1315 = vst [vmem:[%s1797_s17 + $0x4b8] sm:$0xff] %v1059_v16  ;;  %v828_v16 = vmul.f32 0.01, %v316_v8  ;;  %v1082_v21 = vsel %vm570_vm14, %v314_v2, %v826_v10  ;;  %vm586_vm14 = vcmp.gt.f32.partialorder %v330_v50, 0.0  ;;  %v338_v10 = vld [vmem:[%s1782_s24 + $0x630] sm:$0xff] }
  0xc5   : > { %1316 = vst [vmem:[%s1797_s17 + $0x4c0] sm:$0xff] %v1060_v19  ;;  %v829_v19 = vmul.f32 0.01, %v317_v11  ;;  %v1083_v24 = vsel %vm571_vm15, %v315_v5, %v827_v13  ;;  %vm587_vm15 = vcmp.gt.f32.partialorder %v331_v53, 0.0  ;;  %v339_v13 = vld [vmem:[%s1782_s24 + $0x638] sm:$0xff] }
  0xc6   : > { %1317 = vst [vmem:[%s1797_s17 + $0x4c8] sm:$0xff] %v1061_v22  ;;  %v830_v22 = vmul.f32 0.01, %v318_v14  ;;  %v1084_v27 = vsel %vm572_vm0, %v316_v8, %v828_v16  ;;  %vm588_vm0 = vcmp.gt.f32.partialorder %v332_v56, 0.0  ;;  %v340_v16 = vld [vmem:[%s1782_s24 + $0x640] sm:$0xff] }
  0xc7   : > { %1318 = vst [vmem:[%s1797_s17 + $0x4d0] sm:$0xff] %v1062_v25  ;;  %v831_v25 = vmul.f32 0.01, %v319_v17  ;;  %v1085_v30 = vsel %vm573_vm1, %v317_v11, %v829_v19  ;;  %vm589_vm1 = vcmp.gt.f32.partialorder %v333_v59, 0.0  ;;  %v341_v19 = vld [vmem:[%s1782_s24 + $0x648] sm:$0xff] }
  0xc8   : > { %1319 = vst [vmem:[%s1797_s17 + $0x4d8] sm:$0xff] %v1063_v28  ;;  %v832_v28 = vmul.f32 0.01, %v320_v20  ;;  %v1086_v33 = vsel %vm574_vm2, %v318_v14, %v830_v22  ;;  %vm590_vm2 = vcmp.gt.f32.partialorder %v334_v62, 0.0  ;;  %v342_v22 = vld [vmem:[%s1782_s24 + $0x650] sm:$0xff] }
  0xc9   : > { %1320 = vst [vmem:[%s1797_s17 + $0x4e0] sm:$0xff] %v1064_v31  ;;  %v833_v31 = vmul.f32 0.01, %v321_v23  ;;  %v1087_v36 = vsel %vm575_vm3, %v319_v17, %v831_v25  ;;  %vm591_vm3 = vcmp.gt.f32.partialorder %v335_v1, 0.0  ;;  %v343_v25 = vld [vmem:[%s1782_s24 + $0x658] sm:$0xff] }
  0xca   : > { %1321 = vst [vmem:[%s1797_s17 + $0x4e8] sm:$0xff] %v1065_v34  ;;  %v834_v34 = vmul.f32 0.01, %v322_v26  ;;  %v1088_v39 = vsel %vm576_vm4, %v320_v20, %v832_v28  ;;  %vm592_vm4 = vcmp.gt.f32.partialorder %v336_v4, 0.0  ;;  %v344_v28 = vld [vmem:[%s1782_s24 + $0x660] sm:$0xff] }
  0xcb   : > { %1322 = vst [vmem:[%s1797_s17 + $0x4f0] sm:$0xff] %v1066_v37  ;;  %v835_v37 = vmul.f32 0.01, %v323_v29  ;;  %v1089_v42 = vsel %vm577_vm5, %v321_v23, %v833_v31  ;;  %vm593_vm5 = vcmp.gt.f32.partialorder %v337_v7, 0.0  ;;  %v345_v31 = vld [vmem:[%s1782_s24 + $0x668] sm:$0xff] }
  0xcc   : > { %1323 = vst [vmem:[%s1797_s17 + $0x4f8] sm:$0xff] %v1067_v40  ;;  %v836_v40 = vmul.f32 0.01, %v324_v32  ;;  %v1090_v45 = vsel %vm578_vm6, %v322_v26, %v834_v34  ;;  %vm594_vm6 = vcmp.gt.f32.partialorder %v338_v10, 0.0  ;;  %v346_v34 = vld [vmem:[%s1782_s24 + $0x670] sm:$0xff] }
  0xcd   : > { %1324 = vst [vmem:[%s1797_s17 + $0x500] sm:$0xff] %v1068_v43  ;;  %v837_v43 = vmul.f32 0.01, %v325_v35  ;;  %v1091_v48 = vsel %vm579_vm7, %v323_v29, %v835_v37  ;;  %vm595_vm7 = vcmp.gt.f32.partialorder %v339_v13, 0.0  ;;  %v347_v37 = vld [vmem:[%s1782_s24 + $0x678] sm:$0xff] }
  0xce   : > { %1325 = vst [vmem:[%s1797_s17 + $0x508] sm:$0xff] %v1069_v46  ;;  %v838_v46 = vmul.f32 0.01, %v326_v38  ;;  %v1092_v51 = vsel %vm580_vm8, %v324_v32, %v836_v40  ;;  %vm596_vm8 = vcmp.gt.f32.partialorder %v340_v16, 0.0  ;;  %v348_v40 = vld [vmem:[%s1782_s24 + $0x680] sm:$0xff] }
  0xcf   : > { %1326 = vst [vmem:[%s1797_s17 + $0x510] sm:$0xff] %v1070_v49  ;;  %v839_v49 = vmul.f32 0.01, %v327_v41  ;;  %v1093_v54 = vsel %vm581_vm9, %v325_v35, %v837_v43  ;;  %vm597_vm9 = vcmp.gt.f32.partialorder %v341_v19, 0.0  ;;  %v349_v43 = vld [vmem:[%s1782_s24 + $0x688] sm:$0xff] }
  0xd0   : > { %1327 = vst [vmem:[%s1797_s17 + $0x518] sm:$0xff] %v1071_v52  ;;  %v840_v52 = vmul.f32 0.01, %v328_v44  ;;  %v1094_v57 = vsel %vm582_vm10, %v326_v38, %v838_v46  ;;  %vm598_vm10 = vcmp.gt.f32.partialorder %v342_v22, 0.0  ;;  %v350_v46 = vld [vmem:[%s1782_s24 + $0x690] sm:$0xff] }
  0xd1   : > { %1328 = vst [vmem:[%s1797_s17 + $0x520] sm:$0xff] %v1072_v55  ;;  %v841_v55 = vmul.f32 0.01, %v329_v47  ;;  %v1095_v60 = vsel %vm583_vm11, %v327_v41, %v839_v49  ;;  %vm599_vm11 = vcmp.gt.f32.partialorder %v343_v25, 0.0  ;;  %v351_v49 = vld [vmem:[%s1782_s24 + $0x698] sm:$0xff] }
  0xd2   : > { %1329 = vst [vmem:[%s1797_s17 + $0x528] sm:$0xff] %v1073_v58  ;;  %v842_v58 = vmul.f32 0.01, %v330_v50  ;;  %v1096_v63 = vsel %vm584_vm12, %v328_v44, %v840_v52  ;;  %vm600_vm12 = vcmp.gt.f32.partialorder %v344_v28, 0.0  ;;  %v352_v52 = vld [vmem:[%s1782_s24 + $0x6a0] sm:$0xff] }
  0xd3   : > { %1330 = vst [vmem:[%s1797_s17 + $0x530] sm:$0xff] %v1074_v61  ;;  %v843_v61 = vmul.f32 0.01, %v331_v53  ;;  %v1097_v2 = vsel %vm585_vm13, %v329_v47, %v841_v55  ;;  %vm601_vm13 = vcmp.gt.f32.partialorder %v345_v31, 0.0  ;;  %v353_v55 = vld [vmem:[%s1782_s24 + $0x6a8] sm:$0xff] }
  0xd4   : > { %1331 = vst [vmem:[%s1797_s17 + $0x538] sm:$0xff] %v1075_v0  ;;  %v844_v0 = vmul.f32 0.01, %v332_v56  ;;  %v1098_v5 = vsel %vm586_vm14, %v330_v50, %v842_v58  ;;  %vm602_vm14 = vcmp.gt.f32.partialorder %v346_v34, 0.0  ;;  %v354_v58 = vld [vmem:[%s1782_s24 + $0x6b0] sm:$0xff] }
  0xd5   : > { %1332 = vst [vmem:[%s1797_s17 + $0x540] sm:$0xff] %v1076_v3  ;;  %v845_v3 = vmul.f32 0.01, %v333_v59  ;;  %v1099_v8 = vsel %vm587_vm15, %v331_v53, %v843_v61  ;;  %vm603_vm15 = vcmp.gt.f32.partialorder %v347_v37, 0.0  ;;  %v355_v61 = vld [vmem:[%s1782_s24 + $0x6b8] sm:$0xff] }
  0xd6   : > { %1333 = vst [vmem:[%s1797_s17 + $0x548] sm:$0xff] %v1077_v6  ;;  %v846_v6 = vmul.f32 0.01, %v334_v62  ;;  %v1100_v11 = vsel %vm588_vm0, %v332_v56, %v844_v0  ;;  %vm604_vm0 = vcmp.gt.f32.partialorder %v348_v40, 0.0  ;;  %v356_v0 = vld [vmem:[%s1782_s24 + $0x6c0] sm:$0xff] }
  0xd7   : > { %1334 = vst [vmem:[%s1797_s17 + $0x550] sm:$0xff] %v1078_v9  ;;  %v847_v9 = vmul.f32 0.01, %v335_v1  ;;  %v1101_v14 = vsel %vm589_vm1, %v333_v59, %v845_v3  ;;  %vm605_vm1 = vcmp.gt.f32.partialorder %v349_v43, 0.0  ;;  %v357_v3 = vld [vmem:[%s1782_s24 + $0x6c8] sm:$0xff] }
  0xd8   : > { %1335 = vst [vmem:[%s1797_s17 + $0x558] sm:$0xff] %v1079_v12  ;;  %v848_v12 = vmul.f32 0.01, %v336_v4  ;;  %v1102_v17 = vsel %vm590_vm2, %v334_v62, %v846_v6  ;;  %vm606_vm2 = vcmp.gt.f32.partialorder %v350_v46, 0.0  ;;  %v358_v6 = vld [vmem:[%s1782_s24 + $0x6d0] sm:$0xff] }
  0xd9   : > { %1336 = vst [vmem:[%s1797_s17 + $0x560] sm:$0xff] %v1080_v15  ;;  %v849_v15 = vmul.f32 0.01, %v337_v7  ;;  %v1103_v20 = vsel %vm591_vm3, %v335_v1, %v847_v9  ;;  %vm607_vm3 = vcmp.gt.f32.partialorder %v351_v49, 0.0  ;;  %v359_v9 = vld [vmem:[%s1782_s24 + $0x6d8] sm:$0xff] }
  0xda   : > { %1337 = vst [vmem:[%s1797_s17 + $0x568] sm:$0xff] %v1081_v18  ;;  %v850_v18 = vmul.f32 0.01, %v338_v10  ;;  %v1104_v23 = vsel %vm592_vm4, %v336_v4, %v848_v12  ;;  %vm608_vm4 = vcmp.gt.f32.partialorder %v352_v52, 0.0  ;;  %v360_v12 = vld [vmem:[%s1782_s24 + $0x6e0] sm:$0xff] }
  0xdb   : > { %1338 = vst [vmem:[%s1797_s17 + $0x570] sm:$0xff] %v1082_v21  ;;  %v851_v21 = vmul.f32 0.01, %v339_v13  ;;  %v1105_v26 = vsel %vm593_vm5, %v337_v7, %v849_v15  ;;  %vm609_vm5 = vcmp.gt.f32.partialorder %v353_v55, 0.0  ;;  %v361_v15 = vld [vmem:[%s1782_s24 + $0x6e8] sm:$0xff] }
  0xdc   : > { %1339 = vst [vmem:[%s1797_s17 + $0x578] sm:$0xff] %v1083_v24  ;;  %v852_v24 = vmul.f32 0.01, %v340_v16  ;;  %v1106_v29 = vsel %vm594_vm6, %v338_v10, %v850_v18  ;;  %vm610_vm6 = vcmp.gt.f32.partialorder %v354_v58, 0.0  ;;  %v362_v18 = vld [vmem:[%s1782_s24 + $0x6f0] sm:$0xff] }
  0xdd   : > { %1340 = vst [vmem:[%s1797_s17 + $0x580] sm:$0xff] %v1084_v27  ;;  %v853_v27 = vmul.f32 0.01, %v341_v19  ;;  %v1107_v32 = vsel %vm595_vm7, %v339_v13, %v851_v21  ;;  %vm611_vm7 = vcmp.gt.f32.partialorder %v355_v61, 0.0  ;;  %v363_v21 = vld [vmem:[%s1782_s24 + $0x6f8] sm:$0xff] }
  0xde   : > { %1341 = vst [vmem:[%s1797_s17 + $0x588] sm:$0xff] %v1085_v30  ;;  %v854_v30 = vmul.f32 0.01, %v342_v22  ;;  %v1108_v35 = vsel %vm596_vm8, %v340_v16, %v852_v24  ;;  %vm612_vm8 = vcmp.gt.f32.partialorder %v356_v0, 0.0  ;;  %v364_v24 = vld [vmem:[%s1782_s24 + $0x700] sm:$0xff] }
  0xdf   : > { %1342 = vst [vmem:[%s1797_s17 + $0x590] sm:$0xff] %v1086_v33  ;;  %v855_v33 = vmul.f32 0.01, %v343_v25  ;;  %v1109_v38 = vsel %vm597_vm9, %v341_v19, %v853_v27  ;;  %vm613_vm9 = vcmp.gt.f32.partialorder %v357_v3, 0.0  ;;  %v365_v27 = vld [vmem:[%s1782_s24 + $0x708] sm:$0xff] }
  0xe0   : > { %1343 = vst [vmem:[%s1797_s17 + $0x598] sm:$0xff] %v1087_v36  ;;  %v856_v36 = vmul.f32 0.01, %v344_v28  ;;  %v1110_v41 = vsel %vm598_vm10, %v342_v22, %v854_v30  ;;  %vm614_vm10 = vcmp.gt.f32.partialorder %v358_v6, 0.0  ;;  %v366_v30 = vld [vmem:[%s1782_s24 + $0x710] sm:$0xff] }
  0xe1   : > { %1344 = vst [vmem:[%s1797_s17 + $0x5a0] sm:$0xff] %v1088_v39  ;;  %v857_v39 = vmul.f32 0.01, %v345_v31  ;;  %v1111_v44 = vsel %vm599_vm11, %v343_v25, %v855_v33  ;;  %vm615_vm11 = vcmp.gt.f32.partialorder %v359_v9, 0.0  ;;  %v367_v33 = vld [vmem:[%s1782_s24 + $0x718] sm:$0xff] }
  0xe2   : > { %1345 = vst [vmem:[%s1797_s17 + $0x5a8] sm:$0xff] %v1089_v42  ;;  %v858_v42 = vmul.f32 0.01, %v346_v34  ;;  %v1112_v47 = vsel %vm600_vm12, %v344_v28, %v856_v36  ;;  %vm616_vm12 = vcmp.gt.f32.partialorder %v360_v12, 0.0  ;;  %v368_v36 = vld [vmem:[%s1782_s24 + $0x720] sm:$0xff] }
  0xe3   : > { %1346 = vst [vmem:[%s1797_s17 + $0x5b0] sm:$0xff] %v1090_v45  ;;  %v859_v45 = vmul.f32 0.01, %v347_v37  ;;  %v1113_v50 = vsel %vm601_vm13, %v345_v31, %v857_v39  ;;  %vm617_vm13 = vcmp.gt.f32.partialorder %v361_v15, 0.0  ;;  %v369_v39 = vld [vmem:[%s1782_s24 + $0x728] sm:$0xff] }
  0xe4   : > { %1347 = vst [vmem:[%s1797_s17 + $0x5b8] sm:$0xff] %v1091_v48  ;;  %v860_v48 = vmul.f32 0.01, %v348_v40  ;;  %v1114_v53 = vsel %vm602_vm14, %v346_v34, %v858_v42  ;;  %vm618_vm14 = vcmp.gt.f32.partialorder %v362_v18, 0.0  ;;  %v370_v42 = vld [vmem:[%s1782_s24 + $0x730] sm:$0xff] }
  0xe5   : > { %1348 = vst [vmem:[%s1797_s17 + $0x5c0] sm:$0xff] %v1092_v51  ;;  %v861_v51 = vmul.f32 0.01, %v349_v43  ;;  %v1115_v56 = vsel %vm603_vm15, %v347_v37, %v859_v45  ;;  %vm619_vm15 = vcmp.gt.f32.partialorder %v363_v21, 0.0  ;;  %v371_v45 = vld [vmem:[%s1782_s24 + $0x738] sm:$0xff] }
  0xe6   : > { %1349 = vst [vmem:[%s1797_s17 + $0x5c8] sm:$0xff] %v1093_v54  ;;  %v862_v54 = vmul.f32 0.01, %v350_v46  ;;  %v1116_v59 = vsel %vm604_vm0, %v348_v40, %v860_v48  ;;  %vm620_vm0 = vcmp.gt.f32.partialorder %v364_v24, 0.0  ;;  %v372_v48 = vld [vmem:[%s1782_s24 + $0x740] sm:$0xff] }
  0xe7   : > { %1350 = vst [vmem:[%s1797_s17 + $0x5d0] sm:$0xff] %v1094_v57  ;;  %v863_v57 = vmul.f32 0.01, %v351_v49  ;;  %v1117_v62 = vsel %vm605_vm1, %v349_v43, %v861_v51  ;;  %vm621_vm1 = vcmp.gt.f32.partialorder %v365_v27, 0.0  ;;  %v373_v51 = vld [vmem:[%s1782_s24 + $0x748] sm:$0xff] }
  0xe8   : > { %1351 = vst [vmem:[%s1797_s17 + $0x5d8] sm:$0xff] %v1095_v60  ;;  %v864_v60 = vmul.f32 0.01, %v352_v52  ;;  %v1118_v1 = vsel %vm606_vm2, %v350_v46, %v862_v54  ;;  %vm622_vm2 = vcmp.gt.f32.partialorder %v366_v30, 0.0  ;;  %v374_v54 = vld [vmem:[%s1782_s24 + $0x750] sm:$0xff] }
  0xe9   : > { %1352 = vst [vmem:[%s1797_s17 + $0x5e0] sm:$0xff] %v1096_v63  ;;  %v865_v63 = vmul.f32 0.01, %v353_v55  ;;  %v1119_v4 = vsel %vm607_vm3, %v351_v49, %v863_v57  ;;  %vm623_vm3 = vcmp.gt.f32.partialorder %v367_v33, 0.0  ;;  %v375_v57 = vld [vmem:[%s1782_s24 + $0x758] sm:$0xff] }
  0xea   : > { %1353 = vst [vmem:[%s1797_s17 + $0x5e8] sm:$0xff] %v1097_v2  ;;  %v866_v2 = vmul.f32 0.01, %v354_v58  ;;  %v1120_v7 = vsel %vm608_vm4, %v352_v52, %v864_v60  ;;  %vm624_vm4 = vcmp.gt.f32.partialorder %v368_v36, 0.0  ;;  %v376_v60 = vld [vmem:[%s1782_s24 + $0x760] sm:$0xff] }
  0xeb   : > { %1354 = vst [vmem:[%s1797_s17 + $0x5f0] sm:$0xff] %v1098_v5  ;;  %v867_v5 = vmul.f32 0.01, %v355_v61  ;;  %v1121_v10 = vsel %vm609_vm5, %v353_v55, %v865_v63  ;;  %vm625_vm5 = vcmp.gt.f32.partialorder %v369_v39, 0.0  ;;  %v377_v63 = vld [vmem:[%s1782_s24 + $0x768] sm:$0xff] }
  0xec   : > { %1355 = vst [vmem:[%s1797_s17 + $0x5f8] sm:$0xff] %v1099_v8  ;;  %v868_v8 = vmul.f32 0.01, %v356_v0  ;;  %v1122_v13 = vsel %vm610_vm6, %v354_v58, %v866_v2  ;;  %vm626_vm6 = vcmp.gt.f32.partialorder %v370_v42, 0.0  ;;  %v378_v2 = vld [vmem:[%s1782_s24 + $0x770] sm:$0xff] }
  0xed   : > { %1356 = vst [vmem:[%s1797_s17 + $0x600] sm:$0xff] %v1100_v11  ;;  %v869_v11 = vmul.f32 0.01, %v357_v3  ;;  %v1123_v16 = vsel %vm611_vm7, %v355_v61, %v867_v5  ;;  %vm627_vm7 = vcmp.gt.f32.partialorder %v371_v45, 0.0  ;;  %v379_v5 = vld [vmem:[%s1782_s24 + $0x778] sm:$0xff] }
  0xee   : > { %1357 = vst [vmem:[%s1797_s17 + $0x608] sm:$0xff] %v1101_v14  ;;  %v870_v14 = vmul.f32 0.01, %v358_v6  ;;  %v1124_v19 = vsel %vm612_vm8, %v356_v0, %v868_v8  ;;  %vm628_vm8 = vcmp.gt.f32.partialorder %v372_v48, 0.0  ;;  %v380_v8 = vld [vmem:[%s1782_s24 + $0x780] sm:$0xff] }
  0xef   : > { %1358 = vst [vmem:[%s1797_s17 + $0x610] sm:$0xff] %v1102_v17  ;;  %v871_v17 = vmul.f32 0.01, %v359_v9  ;;  %v1125_v22 = vsel %vm613_vm9, %v357_v3, %v869_v11  ;;  %vm629_vm9 = vcmp.gt.f32.partialorder %v373_v51, 0.0  ;;  %v381_v11 = vld [vmem:[%s1782_s24 + $0x788] sm:$0xff] }
  0xf0   : > { %1359 = vst [vmem:[%s1797_s17 + $0x618] sm:$0xff] %v1103_v20  ;;  %v872_v20 = vmul.f32 0.01, %v360_v12  ;;  %v1126_v25 = vsel %vm614_vm10, %v358_v6, %v870_v14  ;;  %vm630_vm10 = vcmp.gt.f32.partialorder %v374_v54, 0.0  ;;  %v382_v14 = vld [vmem:[%s1782_s24 + $0x790] sm:$0xff] }
  0xf1   : > { %1360 = vst [vmem:[%s1797_s17 + $0x620] sm:$0xff] %v1104_v23  ;;  %v873_v23 = vmul.f32 0.01, %v361_v15  ;;  %v1127_v28 = vsel %vm615_vm11, %v359_v9, %v871_v17  ;;  %vm631_vm11 = vcmp.gt.f32.partialorder %v375_v57, 0.0  ;;  %v383_v17 = vld [vmem:[%s1782_s24 + $0x798] sm:$0xff] }
  0xf2   : > { %1361 = vst [vmem:[%s1797_s17 + $0x628] sm:$0xff] %v1105_v26  ;;  %v874_v26 = vmul.f32 0.01, %v362_v18  ;;  %v1128_v31 = vsel %vm616_vm12, %v360_v12, %v872_v20  ;;  %vm632_vm12 = vcmp.gt.f32.partialorder %v376_v60, 0.0  ;;  %v384_v20 = vld [vmem:[%s1782_s24 + $0x7a0] sm:$0xff] }
  0xf3   : > { %1362 = vst [vmem:[%s1797_s17 + $0x630] sm:$0xff] %v1106_v29  ;;  %v875_v29 = vmul.f32 0.01, %v363_v21  ;;  %v1129_v34 = vsel %vm617_vm13, %v361_v15, %v873_v23  ;;  %vm633_vm13 = vcmp.gt.f32.partialorder %v377_v63, 0.0  ;;  %v385_v23 = vld [vmem:[%s1782_s24 + $0x7a8] sm:$0xff] }
  0xf4   : > { %1363 = vst [vmem:[%s1797_s17 + $0x638] sm:$0xff] %v1107_v32  ;;  %v876_v32 = vmul.f32 0.01, %v364_v24  ;;  %v1130_v37 = vsel %vm618_vm14, %v362_v18, %v874_v26  ;;  %vm634_vm14 = vcmp.gt.f32.partialorder %v378_v2, 0.0  ;;  %v386_v26 = vld [vmem:[%s1782_s24 + $0x7b0] sm:$0xff] }
  0xf5   : > { %1364 = vst [vmem:[%s1797_s17 + $0x640] sm:$0xff] %v1108_v35  ;;  %v877_v35 = vmul.f32 0.01, %v365_v27  ;;  %v1131_v40 = vsel %vm619_vm15, %v363_v21, %v875_v29  ;;  %vm635_vm15 = vcmp.gt.f32.partialorder %v379_v5, 0.0  ;;  %v387_v29 = vld [vmem:[%s1782_s24 + $0x7b8] sm:$0xff] }
  0xf6   : > { %1365 = vst [vmem:[%s1797_s17 + $0x648] sm:$0xff] %v1109_v38  ;;  %v878_v38 = vmul.f32 0.01, %v366_v30  ;;  %v1132_v43 = vsel %vm620_vm0, %v364_v24, %v876_v32  ;;  %vm636_vm0 = vcmp.gt.f32.partialorder %v380_v8, 0.0  ;;  %v388_v32 = vld [vmem:[%s1782_s24 + $0x7c0] sm:$0xff] }
  0xf7   : > { %1366 = vst [vmem:[%s1797_s17 + $0x650] sm:$0xff] %v1110_v41  ;;  %v879_v41 = vmul.f32 0.01, %v367_v33  ;;  %v1133_v46 = vsel %vm621_vm1, %v365_v27, %v877_v35  ;;  %vm637_vm1 = vcmp.gt.f32.partialorder %v381_v11, 0.0  ;;  %v389_v35 = vld [vmem:[%s1782_s24 + $0x7c8] sm:$0xff] }
  0xf8   : > { %1367 = vst [vmem:[%s1797_s17 + $0x658] sm:$0xff] %v1111_v44  ;;  %v880_v44 = vmul.f32 0.01, %v368_v36  ;;  %v1134_v49 = vsel %vm622_vm2, %v366_v30, %v878_v38  ;;  %vm638_vm2 = vcmp.gt.f32.partialorder %v382_v14, 0.0  ;;  %v390_v38 = vld [vmem:[%s1782_s24 + $0x7d0] sm:$0xff] }
  0xf9   : > { %1368 = vst [vmem:[%s1797_s17 + $0x660] sm:$0xff] %v1112_v47  ;;  %v881_v47 = vmul.f32 0.01, %v369_v39  ;;  %v1135_v52 = vsel %vm623_vm3, %v367_v33, %v879_v41  ;;  %vm639_vm3 = vcmp.gt.f32.partialorder %v383_v17, 0.0  ;;  %v391_v41 = vld [vmem:[%s1782_s24 + $0x7d8] sm:$0xff] }
  0xfa   : > { %1369 = vst [vmem:[%s1797_s17 + $0x668] sm:$0xff] %v1113_v50  ;;  %v882_v50 = vmul.f32 0.01, %v370_v42  ;;  %v1136_v55 = vsel %vm624_vm4, %v368_v36, %v880_v44  ;;  %vm640_vm4 = vcmp.gt.f32.partialorder %v384_v20, 0.0  ;;  %v392_v44 = vld [vmem:[%s1782_s24 + $0x7e0] sm:$0xff] }
  0xfb   : > { %1370 = vst [vmem:[%s1797_s17 + $0x670] sm:$0xff] %v1114_v53  ;;  %v883_v53 = vmul.f32 0.01, %v371_v45  ;;  %v1137_v58 = vsel %vm625_vm5, %v369_v39, %v881_v47  ;;  %vm641_vm5 = vcmp.gt.f32.partialorder %v385_v23, 0.0  ;;  %v393_v47 = vld [vmem:[%s1782_s24 + $0x7e8] sm:$0xff] }
  0xfc   : > { %1371 = vst [vmem:[%s1797_s17 + $0x678] sm:$0xff] %v1115_v56  ;;  %v884_v56 = vmul.f32 0.01, %v372_v48  ;;  %v1138_v61 = vsel %vm626_vm6, %v370_v42, %v882_v50  ;;  %vm642_vm6 = vcmp.gt.f32.partialorder %v386_v26, 0.0  ;;  %v394_v50 = vld [vmem:[%s1782_s24 + $0x7f0] sm:$0xff] }
  0xfd   : > { %1372 = vst [vmem:[%s1797_s17 + $0x680] sm:$0xff] %v1116_v59  ;;  %v885_v59 = vmul.f32 0.01, %v373_v51  ;;  %v1139_v0 = vsel %vm627_vm7, %v371_v45, %v883_v53  ;;  %vm643_vm7 = vcmp.gt.f32.partialorder %v387_v29, 0.0  ;;  %v395_v53 = vld [vmem:[%s1782_s24 + $0x7f8] sm:$0xff] }
  0xfe   : > { %1373 = vst [vmem:[%s1797_s17 + $0x688] sm:$0xff] %v1117_v62  ;;  %v886_v62 = vmul.f32 0.01, %v374_v54  ;;  %v1140_v3 = vsel %vm628_vm8, %v372_v48, %v884_v56  ;;  %vm644_vm8 = vcmp.gt.f32.partialorder %v388_v32, 0.0 }
  0xff   : > { %1374 = vst [vmem:[%s1797_s17 + $0x690] sm:$0xff] %v1118_v1  ;;  %v887_v1 = vmul.f32 0.01, %v375_v57  ;;  %v1141_v6 = vsel %vm629_vm9, %v373_v51, %v885_v59  ;;  %vm645_vm9 = vcmp.gt.f32.partialorder %v389_v35, 0.0  ;;  %v907_v59 = vmul.f32 0.01, %v395_v53 }
 0x100   : > { %1375 = vst [vmem:[%s1797_s17 + $0x698] sm:$0xff] %v1119_v4  ;;  %v888_v4 = vmul.f32 0.01, %v376_v60  ;;  %v1142_v9 = vsel %vm630_vm10, %v374_v54, %v886_v62  ;;  %vm646_vm10 = vcmp.gt.f32.partialorder %v390_v38, 0.0 }
 0x101   : > { %1376 = vst [vmem:[%s1797_s17 + $0x6a0] sm:$0xff] %v1120_v7  ;;  %v889_v7 = vmul.f32 0.01, %v377_v63  ;;  %v1143_v12 = vsel %vm631_vm11, %v375_v57, %v887_v1  ;;  %vm647_vm11 = vcmp.gt.f32.partialorder %v391_v41, 0.0  ;;  %v906_v57 = vmul.f32 0.01, %v394_v50 }
 0x102   : > { %1377 = vst [vmem:[%s1797_s17 + $0x6a8] sm:$0xff] %v1121_v10  ;;  %v890_v10 = vmul.f32 0.01, %v378_v2  ;;  %v1144_v15 = vsel %vm632_vm12, %v376_v60, %v888_v4  ;;  %vm648_vm12 = vcmp.gt.f32.partialorder %v392_v44, 0.0 }
 0x103   : > { %1378 = vst [vmem:[%s1797_s17 + $0x6b0] sm:$0xff] %v1122_v13  ;;  %v891_v13 = vmul.f32 0.01, %v379_v5  ;;  %v1145_v18 = vsel %vm633_vm13, %v377_v63, %v889_v7  ;;  %vm649_vm13 = vcmp.gt.f32.partialorder %v393_v47, 0.0 }
 0x104   : > { %1379 = vst [vmem:[%s1797_s17 + $0x6b8] sm:$0xff] %v1123_v16  ;;  %v892_v16 = vmul.f32 0.01, %v380_v8  ;;  %v1146_v21 = vsel %vm634_vm14, %v378_v2, %v890_v10  ;;  %vm650_vm14 = vcmp.gt.f32.partialorder %v394_v50, 0.0 }
 0x105   : > { %1380 = vst [vmem:[%s1797_s17 + $0x6c0] sm:$0xff] %v1124_v19  ;;  %v893_v19 = vmul.f32 0.01, %v381_v11  ;;  %v1147_v24 = vsel %vm635_vm15, %v379_v5, %v891_v13  ;;  %vm651_vm15 = vcmp.gt.f32.partialorder %v395_v53, 0.0  ;;  %v1162_v62 = vsel %vm650_vm14, %v394_v50, %v906_v57 }
 0x106   : > { %1381 = vst [vmem:[%s1797_s17 + $0x6c8] sm:$0xff] %v1125_v22  ;;  %v894_v22 = vmul.f32 0.01, %v382_v14  ;;  %v1148_v27 = vsel %vm636_vm0, %v380_v8, %v892_v16  ;;  %v1163_v63 = vsel %vm651_vm15, %v395_v53, %v907_v59 }
 0x107   : > { %1382 = vst [vmem:[%s1797_s17 + $0x6d0] sm:$0xff] %v1126_v25  ;;  %v895_v25 = vmul.f32 0.01, %v383_v17  ;;  %v1149_v30 = vsel %vm637_vm1, %v381_v11, %v893_v19 }
 0x108   : > { %1383 = vst [vmem:[%s1797_s17 + $0x6d8] sm:$0xff] %v1127_v28  ;;  %v896_v28 = vmul.f32 0.01, %v384_v20  ;;  %v1150_v33 = vsel %vm638_vm2, %v382_v14, %v894_v22 }
 0x109   : > { %1384 = vst [vmem:[%s1797_s17 + $0x6e0] sm:$0xff] %v1128_v31  ;;  %v897_v31 = vmul.f32 0.01, %v385_v23  ;;  %v1151_v36 = vsel %vm639_vm3, %v383_v17, %v895_v25 }
 0x10a   : > { %1385 = vst [vmem:[%s1797_s17 + $0x6e8] sm:$0xff] %v1129_v34  ;;  %v898_v34 = vmul.f32 0.01, %v386_v26  ;;  %v1152_v39 = vsel %vm640_vm4, %v384_v20, %v896_v28 }
 0x10b   : > { %1386 = vst [vmem:[%s1797_s17 + $0x6f0] sm:$0xff] %v1130_v37  ;;  %v899_v37 = vmul.f32 0.01, %v387_v29  ;;  %v1153_v42 = vsel %vm641_vm5, %v385_v23, %v897_v31 }
 0x10c   : > { %1387 = vst [vmem:[%s1797_s17 + $0x6f8] sm:$0xff] %v1131_v40  ;;  %v900_v40 = vmul.f32 0.01, %v388_v32  ;;  %v1154_v45 = vsel %vm642_vm6, %v386_v26, %v898_v34 }
 0x10d   : > { %1388 = vst [vmem:[%s1797_s17 + $0x700] sm:$0xff] %v1132_v43  ;;  %v901_v43 = vmul.f32 0.01, %v389_v35  ;;  %v1155_v48 = vsel %vm643_vm7, %v387_v29, %v899_v37 }
 0x10e   : > { %1389 = vst [vmem:[%s1797_s17 + $0x708] sm:$0xff] %v1133_v46  ;;  %v902_v46 = vmul.f32 0.01, %v390_v38  ;;  %v1156_v51 = vsel %vm644_vm8, %v388_v32, %v900_v40 }
 0x10f   : > { %1390 = vst [vmem:[%s1797_s17 + $0x710] sm:$0xff] %v1134_v49  ;;  %v903_v49 = vmul.f32 0.01, %v391_v41  ;;  %v1157_v54 = vsel %vm645_vm9, %v389_v35, %v901_v43 }
 0x110   : > { %1391 = vst [vmem:[%s1797_s17 + $0x718] sm:$0xff] %v1135_v52  ;;  %v904_v52 = vmul.f32 0.01, %v392_v44  ;;  %v1158_v56 = vsel %vm646_vm10, %v390_v38, %v902_v46 }
 0x111   : > { %1392 = vst [vmem:[%s1797_s17 + $0x720] sm:$0xff] %v1136_v55  ;;  %v905_v55 = vmul.f32 0.01, %v393_v47 }
 0x112   : > { %1393 = vst [vmem:[%s1797_s17 + $0x728] sm:$0xff] %v1137_v58  ;;  %v1159_v58 = vsel %vm647_vm11, %v391_v41, %v903_v49  ;;  %v1160_v60 = vsel %vm648_vm12, %v392_v44, %v904_v52 }
 0x113   : > { %1394 = vst [vmem:[%s1797_s17 + $0x730] sm:$0xff] %v1138_v61  ;;  %v1161_v61 = vsel %vm649_vm13, %v393_v47, %v905_v55 }
 0x114   : > { %1395 = vst [vmem:[%s1797_s17 + $0x738] sm:$0xff] %v1139_v0 }
 0x115   : > { %1396 = vst [vmem:[%s1797_s17 + $0x740] sm:$0xff] %v1140_v3 }
 0x116   : > { %1397 = vst [vmem:[%s1797_s17 + $0x748] sm:$0xff] %v1141_v6 }
 0x117   : > { %1398 = vst [vmem:[%s1797_s17 + $0x750] sm:$0xff] %v1142_v9 }
 0x118   : > { %1399 = vst [vmem:[%s1797_s17 + $0x758] sm:$0xff] %v1143_v12 }
 0x119   : > { %1400 = vst [vmem:[%s1797_s17 + $0x760] sm:$0xff] %v1144_v15 }
 0x11a   : > { %1401 = vst [vmem:[%s1797_s17 + $0x768] sm:$0xff] %v1145_v18 }
 0x11b   : > { %1402 = vst [vmem:[%s1797_s17 + $0x770] sm:$0xff] %v1146_v21 }
 0x11c   : > { %1403 = vst [vmem:[%s1797_s17 + $0x778] sm:$0xff] %v1147_v24 }
 0x11d   : > { %1404 = vst [vmem:[%s1797_s17 + $0x780] sm:$0xff] %v1148_v27 }
 0x11e   : > { %1405 = vst [vmem:[%s1797_s17 + $0x788] sm:$0xff] %v1149_v30 }
 0x11f   : > { %1406 = vst [vmem:[%s1797_s17 + $0x790] sm:$0xff] %v1150_v33 }
 0x120   : > { %1407 = vst [vmem:[%s1797_s17 + $0x798] sm:$0xff] %v1151_v36 }
 0x121   : > { %1408 = vst [vmem:[%s1797_s17 + $0x7a0] sm:$0xff] %v1152_v39 }
 0x122   : > { %1409 = vst [vmem:[%s1797_s17 + $0x7a8] sm:$0xff] %v1153_v42 }
 0x123   : > { %1410 = vst [vmem:[%s1797_s17 + $0x7b0] sm:$0xff] %v1154_v45 }
 0x124   : > { %1411 = vst [vmem:[%s1797_s17 + $0x7b8] sm:$0xff] %v1155_v48 }
 0x125   : > { %1412 = vst [vmem:[%s1797_s17 + $0x7c0] sm:$0xff] %v1156_v51 }
 0x126   : > { %1413 = vst [vmem:[%s1797_s17 + $0x7c8] sm:$0xff] %v1157_v54 }
 0x127   : > { %1414 = vst [vmem:[%s1797_s17 + $0x7d0] sm:$0xff] %v1158_v56 }
 0x128   : > { %1415 = vst [vmem:[%s1797_s17 + $0x7d8] sm:$0xff] %v1159_v58 }
 0x129   : > { %1416 = vst [vmem:[%s1797_s17 + $0x7e0] sm:$0xff] %v1160_v60 }
 0x12a   : > { %1417 = vst [vmem:[%s1797_s17 + $0x7e8] sm:$0xff] %v1161_v61 }
 0x12b   : > { %1418 = vst [vmem:[%s1797_s17 + $0x7f0] sm:$0xff] %v1162_v62 }
 0x12c   : > { %1419 = vst [vmem:[%s1797_s17 + $0x7f8] sm:$0xff] %v1163_v63 }
 0x12d   : > { %1637 = shalt.err (!%p1634_p4)
}
 0x12e   : > { %s1680_s16 = smov 2048   ;;  %s1681_s20 = smov 128  }
 0x12f   : > { %1532 = dma.vmem_to_hbm [thread:$0]  (%p1742_p11), %s1435_s28, 32768, %s1437_s29, %s1421_s30, %s1680_s16, %s1680_s16, %s1681_s20  }
 0x130 PF: > { %s1451_s21 = sand.u32 1, %s1664_s6   ;;  %p2343_p7 = scmp.ge.s32.totalorder %s1676_s9, 2 }
 0x131   : > { %s1452_s22 = scalar_lea.sflag [#allocation4], %s1451_s21 }
 0x132   : > { %p1539_p5 = pnand %p2343_p7, %p1746_p12 }
 0x134   : > { %p1540_p8 = pneg %p1539_p5 }
 0x136   : > { %1659 = dma.done.wait (%p1540_p8), %s1452_s22, 32768  }
 0x137   : > { %1661 = vsyncadd (%p1540_p8), %s1452_s22, 4294934528  ;;  %p14_p10 = scmp.ge.s32.totalorder %s1717_s12, 4   ;;  %s2344_s6 = smov %s1668_s7 }
 0x138   : > { %s2345_s7 = smov %s1672_s8  ;;  %s2346_s8 = smov %s1729_s15 }
 0x139   : > { %s2347_s9 = smov %s1717_s12  ;;  %16 = sbr.rel (!%p14_p10) target bundleno = 5 (0x5), region = 69 }
 0x13e   :  { %1458 = vsyncpa [#allocation3], 1 }
 0x13f   :  { %1460 = vsyncpa [#allocation3 + $0x1], 1 }
 0x140   :  { %1461 = vsyncpa [#allocation4], 1 }
 0x141   :  { %1463 = vsyncpa [#allocation4 + $0x1], 1 }

</bundles_post_ra>
